<compile_context>
chip_gen: v6e
topology: v6e:2x2x1
jax: 0.10.0
libtpu: 0.0.40
codegen_flags: <defaults>
</compile_context>

<pallas_src>
import jax
import jax.numpy as jnp
from jax.experimental import pallas as pl
from jax.experimental.pallas import tpu as pltpu

# ---- module hyper-parameters (small, consistent with the reference module) ----
N_BONDS = 5          # len(BONDS)
N_MOLS = 5           # len(MOLS)
N_ATOMS = 8          # N: max # atoms
Z_DIM = 32
DIMS = [64, 128]     # main_mlp: z_dim -> 64 -> 128
A_DIMS = [128]       # a_mlp hidden
X_DIMS = [128]       # x_mlp hidden
BATCH = 4

LANE = 128                       # per-channel lane padding (one vreg lane width)
A_HID = A_DIMS[-1]               # 128
X_HID = X_DIMS[-1]               # 128
A_OUT_W = N_BONDS * LANE         # 640  (5 bond channels x 128 lanes)
X_OUT_W = N_MOLS * LANE          # 640  (5 mol  channels x 128 lanes)
MAX_TILE_B = 512                 # per-step batch tile cap (working set << VMEM)


# ------------------------------- Pallas kernel --------------------------------
def generator_kernel(z_ref,
                     w0_ref, b0_ref, w1_ref, b1_ref,      # main_mlp
                     wax0_ref, bax0_ref,                  # fused a/x first hidden layers
                     wa1_ref, ba1_ref,                    # a final (folded + lane-padded)
                     wx1_ref, bx1_ref,                    # x final (reordered + lane-padded)
                     a_out_ref, x_out_ref):
    f32, bf16 = jnp.float32, jnp.bfloat16

    # main MLP: Linear -> tanh -> Linear -> tanh (bf16 MXU operands, f32 accumulate)
    z = z_ref[...].astype(bf16)
    h = jnp.tanh(jnp.dot(z, w0_ref[...], preferred_element_type=f32) + b0_ref[...])
    base = jnp.tanh(jnp.dot(h.astype(bf16), w1_ref[...], preferred_element_type=f32)
                    + b1_ref[...])

    # fused first hidden layers of both branches: one (128, 256) matmul, then slice
    hax = jnp.tanh(jnp.dot(base.astype(bf16), wax0_ref[...], preferred_element_type=f32)
                   + bax0_ref[...])
    ha = hax[:, :A_HID].astype(bf16)        # 128-lane aligned slices
    hx = hax[:, A_HID:].astype(bf16)

    # final layers (no activation). Channel c occupies lanes [c*128, (c+1)*128);
    # symmetrize/mask of the a branch is exactly pre-folded into wa1/ba1.
    a_logits = jnp.dot(ha, wa1_ref[...], preferred_element_type=f32) + ba1_ref[...]  # (tb, 640)
    x_logits = jnp.dot(hx, wx1_ref[...], preferred_element_type=f32) + bx1_ref[...]  # (tb, 640)

    def channel_softmax(logits, out_ref, n_chan):
        # Softmax ACROSS the n_chan channels, elementwise over whole 128-lane vregs.
        # Three-pass form bounds the live working set to ~2 chunks + m + s per
        # iteration regardless of tile_b (no vreg spill at tile_b = 512).
        # pass 1: running max
        m = logits[:, 0:LANE]
        for c in range(1, n_chan):
            m = jnp.maximum(m, logits[:, c * LANE:(c + 1) * LANE])
        # pass 2: exp, store unnormalized (bf16), accumulate f32 sum
        s = jnp.zeros_like(m)
        for c in range(n_chan):
            e = jnp.exp(logits[:, c * LANE:(c + 1) * LANE] - m)
            s = s + e
            out_ref[:, c * LANE:(c + 1) * LANE] = e.astype(out_ref.dtype)
        # pass 3: normalize in place (reads back from VMEM)
        inv = pl.reciprocal(s, approx=True)   # ~1e-3 rel; fine for 2e-2 tolerance
        for c in range(n_chan):
            out_ref[:, c * LANE:(c + 1) * LANE] = (
                out_ref[:, c * LANE:(c + 1) * LANE].astype(f32) * inv
            ).astype(out_ref.dtype)

    # softmax over bond channel (PyTorch softmax(-3) on (B, BONDS, N, N))
    channel_softmax(a_logits, a_out_ref, N_BONDS)
    # softmax over mol channel (PyTorch softmax(-1) on (B, N, MOLS))
    channel_softmax(x_logits, x_out_ref, N_MOLS)


# ------------------------------ parameter setup --------------------------------
def init_linear(key, fan_in, fan_out):
    kw, kb = jax.random.split(key)
    lim = 1.0 / jnp.sqrt(jnp.float32(fan_in))
    w = jax.random.uniform(kw, (fan_in, fan_out), jnp.float32, -lim, lim)
    b = jax.random.uniform(kb, (fan_out,), jnp.float32, -lim, lim)
    return w, b


def make_params(key):
    main_dims = [Z_DIM] + DIMS
    a_dims = main_dims[-1:] + A_DIMS + [N_BONDS * N_ATOMS ** 2]
    x_dims = main_dims[-1:] + X_DIMS + [N_ATOMS * N_MOLS]
    keys = jax.random.split(key, 6)
    w0, b0 = init_linear(keys[0], main_dims[0], main_dims[1])
    w1, b1 = init_linear(keys[1], main_dims[1], main_dims[2])
    wa0, ba0 = init_linear(keys[2], a_dims[0], a_dims[1])
    wa1, ba1 = init_linear(keys[3], a_dims[1], a_dims[2])
    wx0, bx0 = init_linear(keys[4], x_dims[0], x_dims[1])
    wx1, bx1 = init_linear(keys[5], x_dims[1], x_dims[2])
    return dict(w0=w0, b0=b0, w1=w1, b1=b1,
                wa0=wa0, ba0=ba0, wa1=wa1, ba1=ba1,
                wx0=wx0, bx0=bx0, wx1=wx1, bx1=bx1)


def _fold_a_final(wa1, ba1):
    """Fold (a+a^T)/2, *(1-I), +a^T (i.e. mask*(L+L^T)) into the final a-layer."""
    H = wa1.shape[0]
    mask = 1.0 - jnp.eye(N_ATOMS, dtype=jnp.float32)
    w = wa1.reshape(H, N_BONDS, N_ATOMS, N_ATOMS)
    w_eff = (w + jnp.swapaxes(w, -1, -2)) * mask
    b = ba1.reshape(N_BONDS, N_ATOMS, N_ATOMS)
    b_eff = (b + jnp.swapaxes(b, -1, -2)) * mask
    return (w_eff.reshape(H, N_BONDS, N_ATOMS * N_ATOMS),
            b_eff.reshape(N_BONDS, N_ATOMS * N_ATOMS))


def _reorder_x_final(wx1, bx1):
    """Reorder final x-layer columns from (atom, mol) to (mol, atom)."""
    H = wx1.shape[0]
    w = wx1.reshape(H, N_ATOMS, N_MOLS).transpose(0, 2, 1)    # (H, MOLS, N)
    b = bx1.reshape(N_ATOMS, N_MOLS).transpose(1, 0)          # (MOLS, N)
    return w, b


def _pad_lanes(w_ch, b_ch):
    """(H, C, V)/(C, V) -> pad valid width V up to 128 lanes per channel, flatten.

    Intentional trade-off: the x final weight becomes 94% zero padding, but the
    resulting lane-dense layout gives whole-vreg unmasked stores for every
    softmax chunk (worth more than the ~0.1 us of extra weight DMA here).
    Revisit with a sublane-packed layout only if N_ATOMS/N_MOLS ever grow.
    """
    H, C, V = w_ch.shape
    w = jnp.pad(w_ch, ((0, 0), (0, 0), (0, LANE - V))).reshape(H, C * LANE)
    b = jnp.pad(b_ch, ((0, 0), (0, LANE - V))).reshape(1, C * LANE)
    return w, b


def prepare_params(p):
    """ONE-TIME parameter preparation (hoisted out of the per-call forward path)."""
    wa1_f, ba1_f = _fold_a_final(p["wa1"], p["ba1"])
    wx1_r, bx1_r = _reorder_x_final(p["wx1"], p["bx1"])
    wa1_p, ba1_p = _pad_lanes(wa1_f, ba1_f)
    wx1_p, bx1_p = _pad_lanes(wx1_r, bx1_r)
    wax0 = jnp.concatenate([p["wa0"], p["wx0"]], axis=1)      # (128, 256)
    bax0 = jnp.concatenate([p["ba0"], p["bx0"]]).reshape(1, -1)
    bf16 = jnp.bfloat16
    # TODO(synk): optional v7x-only fp8 cast of wa1/wx1 (halves final-weight DMA)
    # skipped pending profiling; bf16 kept for portability across v5e/v6e/v7x.
    return dict(
        w0=p["w0"].astype(bf16), b0=p["b0"].reshape(1, -1),
        w1=p["w1"].astype(bf16), b1=p["b1"].reshape(1, -1),
        wax0=wax0.astype(bf16), bax0=bax0,
        wa1=wa1_p.astype(bf16), ba1=ba1_p,
        wx1=wx1_p.astype(bf16), bx1=bx1_p,
    )


# --------------------------------- wrapper -------------------------------------
def _round_up(x, m):
    return (x + m - 1) // m * m


def _choose_tiling(batch):
    """Return (padded_batch, batch_tile).

    - pad batch to a sublane multiple (8);
    - whenever >= 16 rows, split into >= 2 grid steps so the "parallel" axis can
      shard across both TensorCores on v7x;
    - cap the per-step tile at 512 rows (working set ~6-8 MiB, well under the
      scoped VMEM default on all generations) to amortize the ~0.35 us/step
      pipeline overhead at large batch.
    """
    b_pad = _round_up(batch, 8)
    if b_pad < 16:
        return b_pad, b_pad                       # too small to split usefully
    if b_pad <= 2 * MAX_TILE_B:
        b_pad = _round_up(b_pad, 16)
        return b_pad, b_pad // 2                  # exactly 2 steps
    b_pad = _round_up(b_pad, MAX_TILE_B)
    return b_pad, MAX_TILE_B                      # >= 3 steps of 512 rows


@jax.jit
def generator_forward(z, prepped):
    unbatched = (z.ndim == 1)
    if unbatched:
        z = z[None, :]
    B = z.shape[0]
    B_pad, tile_b = _choose_tiling(B)
    if B_pad != B:
        z = jnp.pad(z, ((0, B_pad - B), (0, 0)))
    grid = (B_pad // tile_b,)

    def full(arr):
        # Weights/biases: full-array block, constant index -> stay VMEM-resident
        # across grid steps.  (pl.Buffered(1) single-buffering skipped: marginal
        # ~0.4 MiB VMEM saving and VMEM is not a constraint at these sizes.)
        return pl.BlockSpec(arr.shape, lambda i: (0, 0))

    p = prepped
    in_specs = [pl.BlockSpec((tile_b, Z_DIM), lambda i: (i, 0)),
                full(p["w0"]), full(p["b0"]), full(p["w1"]), full(p["b1"]),
                full(p["wax0"]), full(p["bax0"]),
                full(p["wa1"]), full(p["ba1"]),
                full(p["wx1"]), full(p["bx1"])]
    out_specs = (pl.BlockSpec((tile_b, A_OUT_W), lambda i: (i, 0)),
                 pl.BlockSpec((tile_b, X_OUT_W), lambda i: (i, 0)))

    # bf16 outputs: halves vst count + HBM writeback (biggest win on v5e).
    a_2d, x_2d = pl.pallas_call(
        generator_kernel,
        out_shape=(jax.ShapeDtypeStruct((B_pad, A_OUT_W), jnp.bfloat16),
                   jax.ShapeDtypeStruct((B_pad, X_OUT_W), jnp.bfloat16)),
        grid=grid,
        in_specs=in_specs,
        out_specs=out_specs,
        compiler_params=pltpu.CompilerParams(dimension_semantics=("parallel",)),
    )(z, p["w0"], p["b0"], p["w1"], p["b1"], p["wax0"], p["bax0"],
      p["wa1"], p["ba1"], p["wx1"], p["bx1"])

    # strip batch padding + per-channel lane padding, upcast, restore PyTorch shapes
    a = (a_2d[:B].astype(jnp.float32)
         .reshape(B, N_BONDS, LANE)[:, :, :N_ATOMS * N_ATOMS]
         .reshape(B, N_BONDS, N_ATOMS, N_ATOMS))
    x = (x_2d[:B].astype(jnp.float32)
         .reshape(B, N_MOLS, LANE)[:, :, :N_ATOMS]
         .transpose(0, 2, 1))                                   # (B, N, MOLS)
    if unbatched:
        a, x = a[0], x[0]
    # TODO(synk): data_from_graph_and_try_batch is a deepchem data-packaging call
    # with no Pallas/JAX equivalent; we return the (x, a) graph tensors directly.
    return x, a


# ---------------------------- pure-JAX reference --------------------------------
def reference_forward(z, p):
    base = jnp.tanh(jnp.tanh(z @ p["w0"] + p["b0"]) @ p["w1"] + p["b1"])
    a = (jnp.tanh(base @ p["wa0"] + p["ba0"]) @ p["wa1"] + p["ba1"]
         ).reshape(-1, N_BONDS, N_ATOMS, N_ATOMS)
    a = (a + jnp.swapaxes(a, -1, -2)) / 2
    a = a * (1.0 - jnp.eye(N_ATOMS, dtype=jnp.float32))
    x = (jnp.tanh(base @ p["wx0"] + p["bx0"]) @ p["wx1"] + p["bx1"]
         ).reshape(-1, N_ATOMS, N_MOLS)
    a = a + jnp.swapaxes(a, -1, -2)
    a = jax.nn.softmax(a, axis=-3)
    x = jax.nn.softmax(x, axis=-1)
    return x, a


if __name__ == "__main__":
    key = jax.random.PRNGKey(0)
    kz, kp = jax.random.split(key)
    params = make_params(kp)
    prepped = jax.block_until_ready(prepare_params(params))   # one-time prep (hoisted)

    # batch=4 exercises the single-step path; batch=20 exercises the padded,
    # 2-step (dual-TensorCore on v7x) path.
    for batch in (BATCH, 20):
        zb = jax.random.normal(jax.random.fold_in(kz, batch), (batch, Z_DIM), jnp.float32)
        x, a = jax.block_until_ready(generator_forward(zb, prepped))
        x_ref, a_ref = jax.block_until_ready(reference_forward(zb, params))
        assert x.shape == (batch, N_ATOMS, N_MOLS)
        assert a.shape == (batch, N_BONDS, N_ATOMS, N_ATOMS)
        # bf16 MXU operands + bf16 outputs + approx reciprocal -> looser-than-f32 tol
        assert bool(jnp.allclose(x, x_ref, rtol=2e-2, atol=2e-2)), "x mismatch vs reference"
        assert bool(jnp.allclose(a, a_ref, rtol=2e-2, atol=2e-2)), "a mismatch vs reference"
    print("KERNEL_OK")
</pallas_src>

<mosaic_0001>
module attributes {stable_mosaic.version = 11 : i64} {
  func.func @generator_kernel(%arg0: i32, %arg1: memref<8x32xf32, #tpu.memory_space<vmem>>, %arg2: memref<32x64xbf16, #tpu.memory_space<vmem>>, %arg3: memref<1x64xf32, #tpu.memory_space<vmem>>, %arg4: memref<64x128xbf16, #tpu.memory_space<vmem>>, %arg5: memref<1x128xf32, #tpu.memory_space<vmem>>, %arg6: memref<128x256xbf16, #tpu.memory_space<vmem>>, %arg7: memref<1x256xf32, #tpu.memory_space<vmem>>, %arg8: memref<128x640xbf16, #tpu.memory_space<vmem>>, %arg9: memref<1x640xf32, #tpu.memory_space<vmem>>, %arg10: memref<128x640xbf16, #tpu.memory_space<vmem>>, %arg11: memref<1x640xf32, #tpu.memory_space<vmem>>, %arg12: memref<8x640xbf16, #tpu.memory_space<vmem>>, %arg13: memref<8x640xbf16, #tpu.memory_space<vmem>>) attributes {dimension_semantics = [#tpu.dimension_semantics<parallel>], iteration_bounds = array<i64: 1>, scalar_prefetch = 0 : i64, scratch_operands = 0 : i64, tpu.core_type = #tpu.core_type<tc>, window_params = [{transform_indices = @transform_0, window_bounds = array<i64: 8, 32>}, {pipeline_mode = #tpu.pipeline_mode<synchronous>, transform_indices = @transform_1, window_bounds = array<i64: 32, 64>}, {pipeline_mode = #tpu.pipeline_mode<synchronous>, transform_indices = @transform_2, window_bounds = array<i64: 1, 64>}, {pipeline_mode = #tpu.pipeline_mode<synchronous>, transform_indices = @transform_3, window_bounds = array<i64: 64, 128>}, {pipeline_mode = #tpu.pipeline_mode<synchronous>, transform_indices = @transform_4, window_bounds = array<i64: 1, 128>}, {pipeline_mode = #tpu.pipeline_mode<synchronous>, transform_indices = @transform_5, window_bounds = array<i64: 128, 256>}, {pipeline_mode = #tpu.pipeline_mode<synchronous>, transform_indices = @transform_6, window_bounds = array<i64: 1, 256>}, {pipeline_mode = #tpu.pipeline_mode<synchronous>, transform_indices = @transform_7, window_bounds = array<i64: 128, 640>}, {pipeline_mode = #tpu.pipeline_mode<synchronous>, transform_indices = @transform_8, window_bounds = array<i64: 1, 640>}, {pipeline_mode = #tpu.pipeline_mode<synchronous>, transform_indices = @transform_9, window_bounds = array<i64: 128, 640>}, {pipeline_mode = #tpu.pipeline_mode<synchronous>, transform_indices = @transform_10, window_bounds = array<i64: 1, 640>}, {transform_indices = @transform_11, window_bounds = array<i64: 8, 640>}, {transform_indices = @transform_12, window_bounds = array<i64: 8, 640>}]} {
    %c0 = arith.constant 0 : index
    %c0_0 = arith.constant 0 : index
    %0 = vector.load %arg1[%c0, %c0_0] : memref<8x32xf32, #tpu.memory_space<vmem>>, vector<8x32xf32>
    %1 = arith.truncf %0 : vector<8x32xf32> to vector<8x32xbf16>
    %c0_1 = arith.constant 0 : index
    %c0_2 = arith.constant 0 : index
    %2 = vector.load %arg2[%c0_1, %c0_2] : memref<32x64xbf16, #tpu.memory_space<vmem>>, vector<32x64xbf16>
    %cst = arith.constant dense<0.000000e+00> : vector<8x64xf32>
    %3 = tpu.matmul %1, %2, %cst {dimension_numbers = #tpu.dot_dimension_numbers<[1], [0], [0], [1], [0, 0, 1, 1], [], []>} : vector<8x32xbf16>, vector<32x64xbf16>, vector<8x64xf32> -> vector<8x64xf32>
    %c0_3 = arith.constant 0 : index
    %c0_4 = arith.constant 0 : index
    %4 = vector.load %arg3[%c0_3, %c0_4] : memref<1x64xf32, #tpu.memory_space<vmem>>, vector<1x64xf32>
    %5 = vector.broadcast %4 : vector<1x64xf32> to vector<8x64xf32>
    %6 = arith.addf %3, %5 : vector<8x64xf32>
    %7 = math.tanh %6 : vector<8x64xf32>
    %8 = arith.truncf %7 : vector<8x64xf32> to vector<8x64xbf16>
    %c0_5 = arith.constant 0 : index
    %c0_6 = arith.constant 0 : index
    %9 = vector.load %arg4[%c0_5, %c0_6] : memref<64x128xbf16, #tpu.memory_space<vmem>>, vector<64x128xbf16>
    %cst_7 = arith.constant dense<0.000000e+00> : vector<8x128xf32>
    %10 = tpu.matmul %8, %9, %cst_7 {dimension_numbers = #tpu.dot_dimension_numbers<[1], [0], [0], [1], [0, 0, 1, 1], [], []>} : vector<8x64xbf16>, vector<64x128xbf16>, vector<8x128xf32> -> vector<8x128xf32>
    %c0_8 = arith.constant 0 : index
    %c0_9 = arith.constant 0 : index
    %11 = vector.load %arg5[%c0_8, %c0_9] : memref<1x128xf32, #tpu.memory_space<vmem>>, vector<1x128xf32>
    %12 = vector.broadcast %11 : vector<1x128xf32> to vector<8x128xf32>
    %13 = arith.addf %10, %12 : vector<8x128xf32>
    %14 = math.tanh %13 : vector<8x128xf32>
    %15 = arith.truncf %14 : vector<8x128xf32> to vector<8x128xbf16>
    %c0_10 = arith.constant 0 : index
    %c0_11 = arith.constant 0 : index
    %16 = vector.load %arg6[%c0_10, %c0_11] : memref<128x256xbf16, #tpu.memory_space<vmem>>, vector<128x256xbf16>
    %cst_12 = arith.constant dense<0.000000e+00> : vector<8x256xf32>
    %17 = tpu.matmul %15, %16, %cst_12 {dimension_numbers = #tpu.dot_dimension_numbers<[1], [0], [0], [1], [0, 0, 1, 1], [], []>} : vector<8x128xbf16>, vector<128x256xbf16>, vector<8x256xf32> -> vector<8x256xf32>
    %c0_13 = arith.constant 0 : index
    %c0_14 = arith.constant 0 : index
    %18 = vector.load %arg7[%c0_13, %c0_14] : memref<1x256xf32, #tpu.memory_space<vmem>>, vector<1x256xf32>
    %19 = vector.broadcast %18 : vector<1x256xf32> to vector<8x256xf32>
    %20 = arith.addf %17, %19 : vector<8x256xf32>
    %21 = math.tanh %20 : vector<8x256xf32>
    %22 = vector.extract_strided_slice %21 {offsets = [0, 0], sizes = [8, 128], strides = [1, 1]} : vector<8x256xf32> to vector<8x128xf32>
    %23 = arith.truncf %22 : vector<8x128xf32> to vector<8x128xbf16>
    %24 = vector.extract_strided_slice %21 {offsets = [0, 128], sizes = [8, 128], strides = [1, 1]} : vector<8x256xf32> to vector<8x128xf32>
    %25 = arith.truncf %24 : vector<8x128xf32> to vector<8x128xbf16>
    %c0_15 = arith.constant 0 : index
    %c0_16 = arith.constant 0 : index
    %26 = vector.load %arg8[%c0_15, %c0_16] : memref<128x640xbf16, #tpu.memory_space<vmem>>, vector<128x640xbf16>
    %cst_17 = arith.constant dense<0.000000e+00> : vector<8x640xf32>
    %27 = tpu.matmul %23, %26, %cst_17 {dimension_numbers = #tpu.dot_dimension_numbers<[1], [0], [0], [1], [0, 0, 1, 1], [], []>} : vector<8x128xbf16>, vector<128x640xbf16>, vector<8x640xf32> -> vector<8x640xf32>
    %c0_18 = arith.constant 0 : index
    %c0_19 = arith.constant 0 : index
    %28 = vector.load %arg9[%c0_18, %c0_19] : memref<1x640xf32, #tpu.memory_space<vmem>>, vector<1x640xf32>
    %29 = vector.broadcast %28 : vector<1x640xf32> to vector<8x640xf32>
    %30 = arith.addf %27, %29 : vector<8x640xf32>
    %c0_20 = arith.constant 0 : index
    %c0_21 = arith.constant 0 : index
    %31 = vector.load %arg10[%c0_20, %c0_21] : memref<128x640xbf16, #tpu.memory_space<vmem>>, vector<128x640xbf16>
    %cst_22 = arith.constant dense<0.000000e+00> : vector<8x640xf32>
    %32 = tpu.matmul %25, %31, %cst_22 {dimension_numbers = #tpu.dot_dimension_numbers<[1], [0], [0], [1], [0, 0, 1, 1], [], []>} : vector<8x128xbf16>, vector<128x640xbf16>, vector<8x640xf32> -> vector<8x640xf32>
    %c0_23 = arith.constant 0 : index
    %c0_24 = arith.constant 0 : index
    %33 = vector.load %arg11[%c0_23, %c0_24] : memref<1x640xf32, #tpu.memory_space<vmem>>, vector<1x640xf32>
    %34 = vector.broadcast %33 : vector<1x640xf32> to vector<8x640xf32>
    %35 = arith.addf %32, %34 : vector<8x640xf32>
    %36 = vector.extract_strided_slice %30 {offsets = [0, 0], sizes = [8, 128], strides = [1, 1]} : vector<8x640xf32> to vector<8x128xf32>
    %37 = vector.extract_strided_slice %30 {offsets = [0, 128], sizes = [8, 128], strides = [1, 1]} : vector<8x640xf32> to vector<8x128xf32>
    %38 = arith.maximumf %36, %37 : vector<8x128xf32>
    %39 = vector.extract_strided_slice %30 {offsets = [0, 256], sizes = [8, 128], strides = [1, 1]} : vector<8x640xf32> to vector<8x128xf32>
    %40 = arith.maximumf %38, %39 : vector<8x128xf32>
    %41 = vector.extract_strided_slice %30 {offsets = [0, 384], sizes = [8, 128], strides = [1, 1]} : vector<8x640xf32> to vector<8x128xf32>
    %42 = arith.maximumf %40, %41 : vector<8x128xf32>
    %43 = vector.extract_strided_slice %30 {offsets = [0, 512], sizes = [8, 128], strides = [1, 1]} : vector<8x640xf32> to vector<8x128xf32>
    %44 = arith.maximumf %42, %43 : vector<8x128xf32>
    %cst_25 = arith.constant 0.000000e+00 : f32
    %45 = vector.broadcast %cst_25 : f32 to vector<8x128xf32>
    %46 = vector.extract_strided_slice %30 {offsets = [0, 0], sizes = [8, 128], strides = [1, 1]} : vector<8x640xf32> to vector<8x128xf32>
    %47 = arith.subf %46, %44 : vector<8x128xf32>
    %48 = math.exp %47 : vector<8x128xf32>
    %49 = arith.addf %45, %48 : vector<8x128xf32>
    %50 = arith.truncf %48 : vector<8x128xf32> to vector<8x128xbf16>
    %c0_26 = arith.constant 0 : index
    %c0_27 = arith.constant 0 : index
    %51 = vector.load %arg12[%c0_26, %c0_27] : memref<8x640xbf16, #tpu.memory_space<vmem>>, vector<8x128xbf16>
    tpu.vector_store %arg12[%c0_26, %c0_27], %50 {strides = array<i32>} : memref<8x640xbf16, #tpu.memory_space<vmem>>, vector<8x128xbf16>,
    %52 = vector.extract_strided_slice %30 {offsets = [0, 128], sizes = [8, 128], strides = [1, 1]} : vector<8x640xf32> to vector<8x128xf32>
    %53 = arith.subf %52, %44 : vector<8x128xf32>
    %54 = math.exp %53 : vector<8x128xf32>
    %55 = arith.addf %49, %54 : vector<8x128xf32>
    %56 = arith.truncf %54 : vector<8x128xf32> to vector<8x128xbf16>
    %c0_28 = arith.constant 0 : index
    %c128 = arith.constant 128 : index
    %57 = vector.load %arg12[%c0_28, %c128] : memref<8x640xbf16, #tpu.memory_space<vmem>>, vector<8x128xbf16>
    tpu.vector_store %arg12[%c0_28, %c128], %56 {strides = array<i32>} : memref<8x640xbf16, #tpu.memory_space<vmem>>, vector<8x128xbf16>,
    %58 = vector.extract_strided_slice %30 {offsets = [0, 256], sizes = [8, 128], strides = [1, 1]} : vector<8x640xf32> to vector<8x128xf32>
    %59 = arith.subf %58, %44 : vector<8x128xf32>
    %60 = math.exp %59 : vector<8x128xf32>
    %61 = arith.addf %55, %60 : vector<8x128xf32>
    %62 = arith.truncf %60 : vector<8x128xf32> to vector<8x128xbf16>
    %c0_29 = arith.constant 0 : index
    %c256 = arith.constant 256 : index
    %63 = vector.load %arg12[%c0_29, %c256] : memref<8x640xbf16, #tpu.memory_space<vmem>>, vector<8x128xbf16>
    tpu.vector_store %arg12[%c0_29, %c256], %62 {strides = array<i32>} : memref<8x640xbf16, #tpu.memory_space<vmem>>, vector<8x128xbf16>,
    %64 = vector.extract_strided_slice %30 {offsets = [0, 384], sizes = [8, 128], strides = [1, 1]} : vector<8x640xf32> to vector<8x128xf32>
    %65 = arith.subf %64, %44 : vector<8x128xf32>
    %66 = math.exp %65 : vector<8x128xf32>
    %67 = arith.addf %61, %66 : vector<8x128xf32>
    %68 = arith.truncf %66 : vector<8x128xf32> to vector<8x128xbf16>
    %c0_30 = arith.constant 0 : index
    %c384 = arith.constant 384 : index
    %69 = vector.load %arg12[%c0_30, %c384] : memref<8x640xbf16, #tpu.memory_space<vmem>>, vector<8x128xbf16>
    tpu.vector_store %arg12[%c0_30, %c384], %68 {strides = array<i32>} : memref<8x640xbf16, #tpu.memory_space<vmem>>, vector<8x128xbf16>,
    %70 = vector.extract_strided_slice %30 {offsets = [0, 512], sizes = [8, 128], strides = [1, 1]} : vector<8x640xf32> to vector<8x128xf32>
    %71 = arith.subf %70, %44 : vector<8x128xf32>
    %72 = math.exp %71 : vector<8x128xf32>
    %73 = arith.addf %67, %72 : vector<8x128xf32>
    %74 = arith.truncf %72 : vector<8x128xf32> to vector<8x128xbf16>
    %c0_31 = arith.constant 0 : index
    %c512 = arith.constant 512 : index
    %75 = vector.load %arg12[%c0_31, %c512] : memref<8x640xbf16, #tpu.memory_space<vmem>>, vector<8x128xbf16>
    tpu.vector_store %arg12[%c0_31, %c512], %74 {strides = array<i32>} : memref<8x640xbf16, #tpu.memory_space<vmem>>, vector<8x128xbf16>,
    %76 = tpu.reciprocal %73 {approx = true} : vector<8x128xf32> -> vector<8x128xf32>
    %c0_32 = arith.constant 0 : index
    %c0_33 = arith.constant 0 : index
    %77 = vector.load %arg12[%c0_32, %c0_33] : memref<8x640xbf16, #tpu.memory_space<vmem>>, vector<8x128xbf16>
    %78 = arith.extf %77 : vector<8x128xbf16> to vector<8x128xf32>
    %79 = arith.mulf %78, %76 : vector<8x128xf32>
    %80 = arith.truncf %79 : vector<8x128xf32> to vector<8x128xbf16>
    %c0_34 = arith.constant 0 : index
    %c0_35 = arith.constant 0 : index
    %81 = vector.load %arg12[%c0_34, %c0_35] : memref<8x640xbf16, #tpu.memory_space<vmem>>, vector<8x128xbf16>
    tpu.vector_store %arg12[%c0_34, %c0_35], %80 {strides = array<i32>} : memref<8x640xbf16, #tpu.memory_space<vmem>>, vector<8x128xbf16>,
    %c0_36 = arith.constant 0 : index
    %c128_37 = arith.constant 128 : index
    %82 = vector.load %arg12[%c0_36, %c128_37] : memref<8x640xbf16, #tpu.memory_space<vmem>>, vector<8x128xbf16>
    %83 = arith.extf %82 : vector<8x128xbf16> to vector<8x128xf32>
    %84 = arith.mulf %83, %76 : vector<8x128xf32>
    %85 = arith.truncf %84 : vector<8x128xf32> to vector<8x128xbf16>
    %c0_38 = arith.constant 0 : index
    %c128_39 = arith.constant 128 : index
    %86 = vector.load %arg12[%c0_38, %c128_39] : memref<8x640xbf16, #tpu.memory_space<vmem>>, vector<8x128xbf16>
    tpu.vector_store %arg12[%c0_38, %c128_39], %85 {strides = array<i32>} : memref<8x640xbf16, #tpu.memory_space<vmem>>, vector<8x128xbf16>,
    %c0_40 = arith.constant 0 : index
    %c256_41 = arith.constant 256 : index
    %87 = vector.load %arg12[%c0_40, %c256_41] : memref<8x640xbf16, #tpu.memory_space<vmem>>, vector<8x128xbf16>
    %88 = arith.extf %87 : vector<8x128xbf16> to vector<8x128xf32>
    %89 = arith.mulf %88, %76 : vector<8x128xf32>
    %90 = arith.truncf %89 : vector<8x128xf32> to vector<8x128xbf16>
    %c0_42 = arith.constant 0 : index
    %c256_43 = arith.constant 256 : index
    %91 = vector.load %arg12[%c0_42, %c256_43] : memref<8x640xbf16, #tpu.memory_space<vmem>>, vector<8x128xbf16>
    tpu.vector_store %arg12[%c0_42, %c256_43], %90 {strides = array<i32>} : memref<8x640xbf16, #tpu.memory_space<vmem>>, vector<8x128xbf16>,
    %c0_44 = arith.constant 0 : index
    %c384_45 = arith.constant 384 : index
    %92 = vector.load %arg12[%c0_44, %c384_45] : memref<8x640xbf16, #tpu.memory_space<vmem>>, vector<8x128xbf16>
    %93 = arith.extf %92 : vector<8x128xbf16> to vector<8x128xf32>
    %94 = arith.mulf %93, %76 : vector<8x128xf32>
    %95 = arith.truncf %94 : vector<8x128xf32> to vector<8x128xbf16>
    %c0_46 = arith.constant 0 : index
    %c384_47 = arith.constant 384 : index
    %96 = vector.load %arg12[%c0_46, %c384_47] : memref<8x640xbf16, #tpu.memory_space<vmem>>, vector<8x128xbf16>
    tpu.vector_store %arg12[%c0_46, %c384_47], %95 {strides = array<i32>} : memref<8x640xbf16, #tpu.memory_space<vmem>>, vector<8x128xbf16>,
    %c0_48 = arith.constant 0 : index
    %c512_49 = arith.constant 512 : index
    %97 = vector.load %arg12[%c0_48, %c512_49] : memref<8x640xbf16, #tpu.memory_space<vmem>>, vector<8x128xbf16>
    %98 = arith.extf %97 : vector<8x128xbf16> to vector<8x128xf32>
    %99 = arith.mulf %98, %76 : vector<8x128xf32>
    %100 = arith.truncf %99 : vector<8x128xf32> to vector<8x128xbf16>
    %c0_50 = arith.constant 0 : index
    %c512_51 = arith.constant 512 : index
    %101 = vector.load %arg12[%c0_50, %c512_51] : memref<8x640xbf16, #tpu.memory_space<vmem>>, vector<8x128xbf16>
    tpu.vector_store %arg12[%c0_50, %c512_51], %100 {strides = array<i32>} : memref<8x640xbf16, #tpu.memory_space<vmem>>, vector<8x128xbf16>,
    %102 = vector.extract_strided_slice %35 {offsets = [0, 0], sizes = [8, 128], strides = [1, 1]} : vector<8x640xf32> to vector<8x128xf32>
    %103 = vector.extract_strided_slice %35 {offsets = [0, 128], sizes = [8, 128], strides = [1, 1]} : vector<8x640xf32> to vector<8x128xf32>
    %104 = arith.maximumf %102, %103 : vector<8x128xf32>
    %105 = vector.extract_strided_slice %35 {offsets = [0, 256], sizes = [8, 128], strides = [1, 1]} : vector<8x640xf32> to vector<8x128xf32>
    %106 = arith.maximumf %104, %105 : vector<8x128xf32>
    %107 = vector.extract_strided_slice %35 {offsets = [0, 384], sizes = [8, 128], strides = [1, 1]} : vector<8x640xf32> to vector<8x128xf32>
    %108 = arith.maximumf %106, %107 : vector<8x128xf32>
    %109 = vector.extract_strided_slice %35 {offsets = [0, 512], sizes = [8, 128], strides = [1, 1]} : vector<8x640xf32> to vector<8x128xf32>
    %110 = arith.maximumf %108, %109 : vector<8x128xf32>
    %cst_52 = arith.constant 0.000000e+00 : f32
    %111 = vector.broadcast %cst_52 : f32 to vector<8x128xf32>
    %112 = vector.extract_strided_slice %35 {offsets = [0, 0], sizes = [8, 128], strides = [1, 1]} : vector<8x640xf32> to vector<8x128xf32>
    %113 = arith.subf %112, %110 : vector<8x128xf32>
    %114 = math.exp %113 : vector<8x128xf32>
    %115 = arith.addf %111, %114 : vector<8x128xf32>
    %116 = arith.truncf %114 : vector<8x128xf32> to vector<8x128xbf16>
    %c0_53 = arith.constant 0 : index
    %c0_54 = arith.constant 0 : index
    %117 = vector.load %arg13[%c0_53, %c0_54] : memref<8x640xbf16, #tpu.memory_space<vmem>>, vector<8x128xbf16>
    tpu.vector_store %arg13[%c0_53, %c0_54], %116 {strides = array<i32>} : memref<8x640xbf16, #tpu.memory_space<vmem>>, vector<8x128xbf16>,
    %118 = vector.extract_strided_slice %35 {offsets = [0, 128], sizes = [8, 128], strides = [1, 1]} : vector<8x640xf32> to vector<8x128xf32>
    %119 = arith.subf %118, %110 : vector<8x128xf32>
    %120 = math.exp %119 : vector<8x128xf32>
    %121 = arith.addf %115, %120 : vector<8x128xf32>
    %122 = arith.truncf %120 : vector<8x128xf32> to vector<8x128xbf16>
    %c0_55 = arith.constant 0 : index
    %c128_56 = arith.constant 128 : index
    %123 = vector.load %arg13[%c0_55, %c128_56] : memref<8x640xbf16, #tpu.memory_space<vmem>>, vector<8x128xbf16>
    tpu.vector_store %arg13[%c0_55, %c128_56], %122 {strides = array<i32>} : memref<8x640xbf16, #tpu.memory_space<vmem>>, vector<8x128xbf16>,
    %124 = vector.extract_strided_slice %35 {offsets = [0, 256], sizes = [8, 128], strides = [1, 1]} : vector<8x640xf32> to vector<8x128xf32>
    %125 = arith.subf %124, %110 : vector<8x128xf32>
    %126 = math.exp %125 : vector<8x128xf32>
    %127 = arith.addf %121, %126 : vector<8x128xf32>
    %128 = arith.truncf %126 : vector<8x128xf32> to vector<8x128xbf16>
    %c0_57 = arith.constant 0 : index
    %c256_58 = arith.constant 256 : index
    %129 = vector.load %arg13[%c0_57, %c256_58] : memref<8x640xbf16, #tpu.memory_space<vmem>>, vector<8x128xbf16>
    tpu.vector_store %arg13[%c0_57, %c256_58], %128 {strides = array<i32>} : memref<8x640xbf16, #tpu.memory_space<vmem>>, vector<8x128xbf16>,
    %130 = vector.extract_strided_slice %35 {offsets = [0, 384], sizes = [8, 128], strides = [1, 1]} : vector<8x640xf32> to vector<8x128xf32>
    %131 = arith.subf %130, %110 : vector<8x128xf32>
    %132 = math.exp %131 : vector<8x128xf32>
    %133 = arith.addf %127, %132 : vector<8x128xf32>
    %134 = arith.truncf %132 : vector<8x128xf32> to vector<8x128xbf16>
    %c0_59 = arith.constant 0 : index
    %c384_60 = arith.constant 384 : index
    %135 = vector.load %arg13[%c0_59, %c384_60] : memref<8x640xbf16, #tpu.memory_space<vmem>>, vector<8x128xbf16>
    tpu.vector_store %arg13[%c0_59, %c384_60], %134 {strides = array<i32>} : memref<8x640xbf16, #tpu.memory_space<vmem>>, vector<8x128xbf16>,
    %136 = vector.extract_strided_slice %35 {offsets = [0, 512], sizes = [8, 128], strides = [1, 1]} : vector<8x640xf32> to vector<8x128xf32>
    %137 = arith.subf %136, %110 : vector<8x128xf32>
    %138 = math.exp %137 : vector<8x128xf32>
    %139 = arith.addf %133, %138 : vector<8x128xf32>
    %140 = arith.truncf %138 : vector<8x128xf32> to vector<8x128xbf16>
    %c0_61 = arith.constant 0 : index
    %c512_62 = arith.constant 512 : index
    %141 = vector.load %arg13[%c0_61, %c512_62] : memref<8x640xbf16, #tpu.memory_space<vmem>>, vector<8x128xbf16>
    tpu.vector_store %arg13[%c0_61, %c512_62], %140 {strides = array<i32>} : memref<8x640xbf16, #tpu.memory_space<vmem>>, vector<8x128xbf16>,
    %142 = tpu.reciprocal %139 {approx = true} : vector<8x128xf32> -> vector<8x128xf32>
    %c0_63 = arith.constant 0 : index
    %c0_64 = arith.constant 0 : index
    %143 = vector.load %arg13[%c0_63, %c0_64] : memref<8x640xbf16, #tpu.memory_space<vmem>>, vector<8x128xbf16>
    %144 = arith.extf %143 : vector<8x128xbf16> to vector<8x128xf32>
    %145 = arith.mulf %144, %142 : vector<8x128xf32>
    %146 = arith.truncf %145 : vector<8x128xf32> to vector<8x128xbf16>
    %c0_65 = arith.constant 0 : index
    %c0_66 = arith.constant 0 : index
    %147 = vector.load %arg13[%c0_65, %c0_66] : memref<8x640xbf16, #tpu.memory_space<vmem>>, vector<8x128xbf16>
    tpu.vector_store %arg13[%c0_65, %c0_66], %146 {strides = array<i32>} : memref<8x640xbf16, #tpu.memory_space<vmem>>, vector<8x128xbf16>,
    %c0_67 = arith.constant 0 : index
    %c128_68 = arith.constant 128 : index
    %148 = vector.load %arg13[%c0_67, %c128_68] : memref<8x640xbf16, #tpu.memory_space<vmem>>, vector<8x128xbf16>
    %149 = arith.extf %148 : vector<8x128xbf16> to vector<8x128xf32>
    %150 = arith.mulf %149, %142 : vector<8x128xf32>
    %151 = arith.truncf %150 : vector<8x128xf32> to vector<8x128xbf16>
    %c0_69 = arith.constant 0 : index
    %c128_70 = arith.constant 128 : index
    %152 = vector.load %arg13[%c0_69, %c128_70] : memref<8x640xbf16, #tpu.memory_space<vmem>>, vector<8x128xbf16>
    tpu.vector_store %arg13[%c0_69, %c128_70], %151 {strides = array<i32>} : memref<8x640xbf16, #tpu.memory_space<vmem>>, vector<8x128xbf16>,
    %c0_71 = arith.constant 0 : index
    %c256_72 = arith.constant 256 : index
    %153 = vector.load %arg13[%c0_71, %c256_72] : memref<8x640xbf16, #tpu.memory_space<vmem>>, vector<8x128xbf16>
    %154 = arith.extf %153 : vector<8x128xbf16> to vector<8x128xf32>
    %155 = arith.mulf %154, %142 : vector<8x128xf32>
    %156 = arith.truncf %155 : vector<8x128xf32> to vector<8x128xbf16>
    %c0_73 = arith.constant 0 : index
    %c256_74 = arith.constant 256 : index
    %157 = vector.load %arg13[%c0_73, %c256_74] : memref<8x640xbf16, #tpu.memory_space<vmem>>, vector<8x128xbf16>
    tpu.vector_store %arg13[%c0_73, %c256_74], %156 {strides = array<i32>} : memref<8x640xbf16, #tpu.memory_space<vmem>>, vector<8x128xbf16>,
    %c0_75 = arith.constant 0 : index
    %c384_76 = arith.constant 384 : index
    %158 = vector.load %arg13[%c0_75, %c384_76] : memref<8x640xbf16, #tpu.memory_space<vmem>>, vector<8x128xbf16>
    %159 = arith.extf %158 : vector<8x128xbf16> to vector<8x128xf32>
    %160 = arith.mulf %159, %142 : vector<8x128xf32>
    %161 = arith.truncf %160 : vector<8x128xf32> to vector<8x128xbf16>
    %c0_77 = arith.constant 0 : index
    %c384_78 = arith.constant 384 : index
    %162 = vector.load %arg13[%c0_77, %c384_78] : memref<8x640xbf16, #tpu.memory_space<vmem>>, vector<8x128xbf16>
    tpu.vector_store %arg13[%c0_77, %c384_78], %161 {strides = array<i32>} : memref<8x640xbf16, #tpu.memory_space<vmem>>, vector<8x128xbf16>,
    %c0_79 = arith.constant 0 : index
    %c512_80 = arith.constant 512 : index
    %163 = vector.load %arg13[%c0_79, %c512_80] : memref<8x640xbf16, #tpu.memory_space<vmem>>, vector<8x128xbf16>
    %164 = arith.extf %163 : vector<8x128xbf16> to vector<8x128xf32>
    %165 = arith.mulf %164, %142 : vector<8x128xf32>
    %166 = arith.truncf %165 : vector<8x128xf32> to vector<8x128xbf16>
    %c0_81 = arith.constant 0 : index
    %c512_82 = arith.constant 512 : index
    %167 = vector.load %arg13[%c0_81, %c512_82] : memref<8x640xbf16, #tpu.memory_space<vmem>>, vector<8x128xbf16>
    tpu.vector_store %arg13[%c0_81, %c512_82], %166 {strides = array<i32>} : memref<8x640xbf16, #tpu.memory_space<vmem>>, vector<8x128xbf16>,
    return
  }
  func.func @transform_0(%arg0: i32) -> (i32, i32) {
    %c0_i32 = arith.constant 0 : i32
    %c0_i32_0 = arith.constant 0 : i32
    return %arg0, %c0_i32 : i32, i32
  }
  func.func @transform_1(%arg0: i32) -> (i32, i32) {
    %c0_i32 = arith.constant 0 : i32
    %c0_i32_0 = arith.constant 0 : i32
    %c0_i32_1 = arith.constant 0 : i32
    return %c0_i32, %c0_i32_0 : i32, i32
  }
  func.func @transform_2(%arg0: i32) -> (i32, i32) {
    %c0_i32 = arith.constant 0 : i32
    %c0_i32_0 = arith.constant 0 : i32
    %c0_i32_1 = arith.constant 0 : i32
    return %c0_i32, %c0_i32_0 : i32, i32
  }
  func.func @transform_3(%arg0: i32) -> (i32, i32) {
    %c0_i32 = arith.constant 0 : i32
    %c0_i32_0 = arith.constant 0 : i32
    %c0_i32_1 = arith.constant 0 : i32
    return %c0_i32, %c0_i32_0 : i32, i32
  }
  func.func @transform_4(%arg0: i32) -> (i32, i32) {
    %c0_i32 = arith.constant 0 : i32
    %c0_i32_0 = arith.constant 0 : i32
    %c0_i32_1 = arith.constant 0 : i32
    return %c0_i32, %c0_i32_0 : i32, i32
  }
  func.func @transform_5(%arg0: i32) -> (i32, i32) {
    %c0_i32 = arith.constant 0 : i32
    %c0_i32_0 = arith.constant 0 : i32
    %c0_i32_1 = arith.constant 0 : i32
    return %c0_i32, %c0_i32_0 : i32, i32
  }
  func.func @transform_6(%arg0: i32) -> (i32, i32) {
    %c0_i32 = arith.constant 0 : i32
    %c0_i32_0 = arith.constant 0 : i32
    %c0_i32_1 = arith.constant 0 : i32
    return %c0_i32, %c0_i32_0 : i32, i32
  }
  func.func @transform_7(%arg0: i32) -> (i32, i32) {
    %c0_i32 = arith.constant 0 : i32
    %c0_i32_0 = arith.constant 0 : i32
    %c0_i32_1 = arith.constant 0 : i32
    return %c0_i32, %c0_i32_0 : i32, i32
  }
  func.func @transform_8(%arg0: i32) -> (i32, i32) {
    %c0_i32 = arith.constant 0 : i32
    %c0_i32_0 = arith.constant 0 : i32
    %c0_i32_1 = arith.constant 0 : i32
    return %c0_i32, %c0_i32_0 : i32, i32
  }
  func.func @transform_9(%arg0: i32) -> (i32, i32) {
    %c0_i32 = arith.constant 0 : i32
    %c0_i32_0 = arith.constant 0 : i32
    %c0_i32_1 = arith.constant 0 : i32
    return %c0_i32, %c0_i32_0 : i32, i32
  }
  func.func @transform_10(%arg0: i32) -> (i32, i32) {
    %c0_i32 = arith.constant 0 : i32
    %c0_i32_0 = arith.constant 0 : i32
    %c0_i32_1 = arith.constant 0 : i32
    return %c0_i32, %c0_i32_0 : i32, i32
  }
  func.func @transform_11(%arg0: i32) -> (i32, i32) {
    %c0_i32 = arith.constant 0 : i32
    %c0_i32_0 = arith.constant 0 : i32
    return %arg0, %c0_i32 : i32, i32
  }
  func.func @transform_12(%arg0: i32) -> (i32, i32) {
    %c0_i32 = arith.constant 0 : i32
    %c0_i32_0 = arith.constant 0 : i32
    return %arg0, %c0_i32 : i32, i32
  }
}

</mosaic_0001>

<bundles_post_ra>
// kernel: generator_forward.1
= control target key start
LH: loop header
LB: loop body
LE: loop exit
PB: predicated region body
PF: predicated region fallthrough
CT: control target
= control target key end

     0   :  { %18 = vsyncpa [#allocation3], 0  ;;  %s2173_s0 = inlined_call_operand.vmem [shape: f32[8,32], index: 0, kind: input, shape index: {}]   ;;  %s2174_s1 = inlined_call_operand.vmem [shape: bf16[32,64], index: 1, kind: input, shape index: {}]   ;;  %s2175_s2 = inlined_call_operand.hbm [shape: f32[1,64], index: 2, kind: input, shape index: {}]   ;;  %s2176_s3 = inlined_call_operand.hbm [shape: bf16[64,128], index: 3, kind: input, shape index: {}]   ;;  %s2177_s4 = inlined_call_operand.hbm [shape: f32[1,128], index: 4, kind: input, shape index: {}]   ;;  %s2178_s5 = inlined_call_operand.hbm [shape: bf16[128,256], index: 5, kind: input, shape index: {}]   ;;  %s2179_s6 = inlined_call_operand.vmem [shape: f32[1,256], index: 6, kind: input, shape index: {}]   ;;  %s2180_s7 = inlined_call_operand.hbm [shape: bf16[128,640], index: 7, kind: input, shape index: {}]   ;;  %s2181_s8 = inlined_call_operand.vmem [shape: f32[1,640], index: 8, kind: input, shape index: {}]   ;;  %s2182_s9 = inlined_call_operand.hbm [shape: bf16[128,640], index: 9, kind: input, shape index: {}]   ;;  %s2183_s10 = inlined_call_operand.hbm [shape: f32[1,640], index: 10, kind: input, shape index: {}]   ;;  %s2184_s11 = inlined_call_operand.vmem [shape: bf16[8,640], index: 11, kind: output, shape index: {0}]   ;;  %s2185_s12 = inlined_call_operand.vmem [shape: bf16[8,640], index: 12, kind: output, shape index: {1}]  }
   0x1   :  { %19 = vsyncpa [#allocation5], 0 }
   0x2   :  { %20 = vsyncpa [#allocation8], 0 }
   0x3   :  { %21 = vsyncpa [#allocation11], 0  ;;  %s1911_s21 = smov [#allocation4]  }
   0x4   :  { %s41_s22 = sshll.u32 %s1911_s21, 4  ;;  %s42_s22 = int_to_ptr.vmem [resolvable:$true] %s41_s22 }
   0x5   :  { %s1771_s23 = scalar_lea.vmem %s42_s22, 512  ;;  %p1776_p1 = scmp.lt.s32.totalorder %s42_s22, %s42_s22 }
   0x6   :  { %p1772_p0 = scmp.ne.s32.totalorder %s42_s22, %s1771_s23  ;;  %p1777_p2 = scmp.lt.s32.totalorder %s1771_s23, %s1771_s23 }
   0x8   :  { %p1778_p3 = por %p1777_p2, %p1776_p1 }
   0xa   :  { %p1779_p4 = pnand %p1778_p3, %p1772_p0 }
   0xc   :  { %1782 = shalt.err (!%p1779_p4)
}
   0xd   :  { %s1912_s24 = smov 64   ;;  %s1913_s25 = smov 4  }
   0xe   :  { %47 = dma.hbm_to_vmem [thread:$0]  %s2176_s3, 512, %s42_s22, [#allocation5], %s1912_s24, %s1912_s24, %s1913_s25  }
   0xf   :  { %s1914_s28 = smov [#allocation7]  }
  0x10   :  { %s63_s29 = sshll.u32 %s1914_s28, 4  ;;  %s64_s29 = int_to_ptr.vmem [resolvable:$true] %s63_s29 }
  0x11   :  { %s1791_s30 = scalar_lea.vmem %s64_s29, 2048  ;;  %p1796_p6 = scmp.lt.s32.totalorder %s64_s29, %s64_s29 }
  0x12   :  { %p1792_p5 = scmp.ne.s32.totalorder %s64_s29, %s1791_s30  ;;  %p1797_p7 = scmp.lt.s32.totalorder %s1791_s30, %s1791_s30 }
  0x14   :  { %p1798_p8 = por %p1797_p7, %p1796_p6 }
  0x16   :  { %p1799_p9 = pnand %p1798_p8, %p1792_p5 }
  0x18   :  { %1802 = shalt.err (!%p1799_p9)
}
  0x19   :  { %s1915_s13 = smov 128   ;;  %s1916_s14 = smov 8  }
  0x1a   :  { %69 = dma.hbm_to_vmem [thread:$0]  %s2178_s5, 2048, %s64_s29, [#allocation8], %s1915_s13, %s1915_s13, %s1916_s14  }
  0x1b   :  { %s1917_s17 = smov [#allocation10]   ;;  %s1918_s19 = smov [#allocation2]  }
  0x1c   :  { %s91_s18 = sshll.u32 %s1917_s17, 4  ;;  %s32_s3 = sshll.u32 %s1918_s19, 4  ;;  %s92_s18 = int_to_ptr.vmem [resolvable:$true] %s91_s18  ;;  %s33_s3 = int_to_ptr.vmem [resolvable:$true] %s32_s3 }
  0x1d   :  { %s1811_s20 = scalar_lea.vmem %s92_s18, 5120  ;;  %p1816_p11 = scmp.lt.s32.totalorder %s92_s18, %s92_s18 }
  0x1e   :  { %p1812_p10 = scmp.ne.s32.totalorder %s92_s18, %s1811_s20  ;;  %p1817_p12 = scmp.lt.s32.totalorder %s1811_s20, %s1811_s20 }
  0x20   :  { %p1818_p13 = por %p1817_p12, %p1816_p11 }
  0x22   :  { %p1819_p0 = pnand %p1818_p13, %p1812_p10 }
  0x24   :  { %1822 = shalt.err (!%p1819_p0)
}
  0x25   :  { %s1919_s21 = smov 320   ;;  %s1920_s22 = smov 20  }
  0x26   :  { %97 = dma.hbm_to_vmem [thread:$0]  %s2182_s9, 5120, %s92_s18, [#allocation11], %s1919_s21, %s1919_s21, %s1920_s22  }
  0x27   :  { %s1831_s24 = scalar_lea.vmem %s33_s3, 16  ;;  %s1835_s25 = scalar_lea.vmem %s33_s3, 32 }
  0x28   :  { %p1832_p1 = scmp.ne.s32.totalorder %s33_s3, %s1831_s24  ;;  %p1836_p2 = scmp.lt.s32.totalorder %s33_s3, %s33_s3 }
  0x29   :  { %p1837_p3 = scmp.lt.s32.totalorder %s1835_s25, %s1831_s24 }
  0x2b   :  { %p1838_p4 = por %p1837_p3, %p1836_p2 }
  0x2d   :  { %p1839_p5 = pnand %p1838_p4, %p1832_p1 }
  0x2f   :  { %1842 = shalt.err (!%p1839_p5)
}
  0x30   :  { %35 = dma.hbm_to_vmem [thread:$0]  %s2175_s2, 16, %s33_s3, [#allocation3]  }
  0x31   :  { %s1921_s28 = smov [#allocation6]   ;;  %s1922_s30 = smov [#allocation9]  }
  0x32   :  { %s54_s29 = sshll.u32 %s1921_s28, 4  ;;  %s77_s13 = sshll.u32 %s1922_s30, 4  ;;  %s55_s29 = int_to_ptr.vmem [resolvable:$true] %s54_s29  ;;  %s78_s13 = int_to_ptr.vmem [resolvable:$true] %s77_s13 }
  0x33   :  { %s1851_s14 = scalar_lea.vmem %s55_s29, 16  ;;  %s1855_s9 = scalar_lea.vmem %s55_s29, 32 }
  0x34   :  { %p1852_p6 = scmp.ne.s32.totalorder %s55_s29, %s1851_s14  ;;  %p1856_p7 = scmp.lt.s32.totalorder %s55_s29, %s55_s29 }
  0x35   :  { %p1857_p8 = scmp.lt.s32.totalorder %s1855_s9, %s1851_s14 }
  0x37   :  { %p1858_p9 = por %p1857_p8, %p1856_p7 }
  0x39   :  { %p1859_p10 = pnand %p1858_p9, %p1852_p6 }
  0x3b   :  { %1862 = shalt.err (!%p1859_p10)
}
  0x3c   :  { %57 = dma.hbm_to_vmem [thread:$0]  %s2177_s4, 16, %s55_s29, [#allocation5]  }
  0x3d   :  { %s1871_s17 = scalar_lea.vmem %s78_s13, 5120  ;;  %p1876_p12 = scmp.lt.s32.totalorder %s78_s13, %s78_s13 }
  0x3e   :  { %p1872_p11 = scmp.ne.s32.totalorder %s78_s13, %s1871_s17  ;;  %p1877_p13 = scmp.lt.s32.totalorder %s1871_s17, %s1871_s17 }
  0x40   :  { %p1878_p0 = por %p1877_p13, %p1876_p12 }
  0x42   :  { %p1879_p1 = pnand %p1878_p0, %p1872_p11 }
  0x44   :  { %1882 = shalt.err (!%p1879_p1)
}
  0x45   :  { %83 = dma.hbm_to_vmem [thread:$0]  %s2180_s7, 5120, %s78_s13, [#allocation8], %s1919_s21, %s1919_s21, %s1920_s22  }
  0x46   :  { %s1923_s19 = smov [#allocation12]  }
  0x47   :  { %s104_s3 = sshll.u32 %s1923_s19, 4  ;;  %s105_s3 = int_to_ptr.vmem [resolvable:$true] %s104_s3 }
  0x48   :  { %s1891_s20 = scalar_lea.vmem %s105_s3, 80  ;;  %s1895_s4 = scalar_lea.vmem %s105_s3, 96 }
  0x49   :  { %p1892_p2 = scmp.ne.s32.totalorder %s105_s3, %s1891_s20  ;;  %p1896_p3 = scmp.lt.s32.totalorder %s105_s3, %s105_s3 }
  0x4a   :  { %p1897_p4 = scmp.lt.s32.totalorder %s1895_s4, %s1891_s20 }
  0x4c   :  { %p1898_p5 = por %p1897_p4, %p1896_p3 }
  0x4e   :  { %p1899_p6 = pnand %p1898_p5, %p1892_p2 }
  0x50   :  { %1902 = shalt.err (!%p1899_p6)
}
  0x51   :  { %107 = dma.hbm_to_vmem [thread:$0]  %s2183_s10, 80, %s105_s3, [#allocation11]  }
  0x52   :  { %1903 = dma.done.wait [#allocation3], 16  }
  0x53   :  { %1904 = vsyncadd [#allocation3], 4294967280 }
  0x54   :  { %1905 = dma.done.wait [#allocation5], 528  }
  0x55   :  { %1906 = vsyncadd [#allocation5], 4294966768 }
  0x56   :  { %1907 = dma.done.wait [#allocation8], 7168  }
  0x57   :  { %1908 = vsyncadd [#allocation8], 4294960128 }
  0x58   :  { %1909 = dma.done.wait [#allocation11], 5200  }
  0x59   :  { %1910 = vsyncadd [#allocation11], 4294962096  ;;  %v1924_v0 = vmov 0.0   ;;  %vm1925_vm0 = vmmov 0   ;;  %v1589_v1 = vld [vmem:[%s2174_s1 + $0x8] sm:$0xff]   ;;  %v1590_v2 = vld [vmem:[%s2174_s1] sm:$0xff]  }
  0x5a   :  { %1513 = vmatprep.subr.bf16.mxu1 %v1924_v0  ;;  %1517 = vmatprep.mubr.msk.bf16.mxu1 %vm1925_vm0, %v1924_v0  ;;  %v130_v3 = vld [vmem:[%s2173_s0] sm:$0xff]  ;;  %vm155_vm1 = vcmask 261120   ;;  %v1592_v6 = vld [vmem:[#allocation4 + $0x10] sm:$0xff]   ;;  %v1593_v7 = vld [vmem:[#allocation4 + $0x8] sm:$0xff]   ;;  %vm240_vm2 = vcmask 523264   ;;  %v1926_v31 = vmov 0  }
  0x5b   :  { %1514 = vmatpush3.bf16.msra.mxu1 %v1589_v1  ;;  %v131_v4 = vpack.c.bf16 %v130_v3, %v130_v3  ;;  %v1591_v5 = vld [vmem:[#allocation4 + $0x18] sm:$0xff]   ;;  %v1594_v8 = vld [vmem:[#allocation4] sm:$0xff]   ;;  %426 = vmatprep.mubr.bf16.mxu0 %v1926_v31 }
  0x5c   :  { %1515 = vmatprep.subr.bf16.mxu1 %v1924_v0  ;;  %v1595_v9 = vld [vmem:[#allocation7 + $0x74] ss:$8 sps:$4 sm:$0xff]   ;;  %v1597_v10 = vld [vmem:[#allocation7 + $0x70] ss:$8 sps:$4 sm:$0xff]   ;;  %v1598_v11 = vld [vmem:[#allocation7 + $0x64] ss:$8 sps:$4 sm:$0xff]  }
  0x5d   :  { %394 = vmatprep.subr.bf16.mxu0 %v1595_v9  ;;  %v1600_v12 = vld [vmem:[#allocation7 + $0x60] ss:$8 sps:$4 sm:$0xff]   ;;  %v1601_v13 = vld [vmem:[#allocation7 + $0x54] ss:$8 sps:$4 sm:$0xff]   ;;  %v1603_v14 = vld [vmem:[#allocation7 + $0x50] ss:$8 sps:$4 sm:$0xff]  }
  0x5e   :  { %395 = vmatpush1.bf16.msra.mxu0 %v1597_v10  ;;  %v1604_v15 = vld [vmem:[#allocation7 + $0x44] ss:$8 sps:$4 sm:$0xff]   ;;  %v1381_v16 = vld [vmem:[#allocation2] ss:$0 sm:$0xff]  ;;  %v1606_v24 = vld [vmem:[#allocation7 + $0x40] ss:$8 sps:$4 sm:$0xff]  }
  0x5f   :  { %1516 = vmatpush3.bf16.msra.mxu1 %v1590_v2  ;;  %396 = vmatprep.subr.bf16.mxu0 %v1598_v11  ;;  %v1607_v25 = vld [vmem:[#allocation7 + $0x34] ss:$8 sps:$4 sm:$0xff]   ;;  %v1609_v26 = vld [vmem:[#allocation7 + $0x30] ss:$8 sps:$4 sm:$0xff]   ;;  %v1610_v27 = vld [vmem:[#allocation7 + $0x24] ss:$8 sps:$4 sm:$0xff]  }
  0x60   :  { %1521 = vmatprep.subr.bf16.mxu1 %v1924_v0  ;;  %v1612_v28 = vld [vmem:[#allocation7 + $0x20] ss:$8 sps:$4 sm:$0xff]   ;;  %v1613_v29 = vld [vmem:[#allocation7 + $0x14] ss:$8 sps:$4 sm:$0xff]   ;;  %v1615_v30 = vld [vmem:[#allocation7 + $0x10] ss:$8 sps:$4 sm:$0xff]  }
  0x61   :  { %v1616_v32 = vld [vmem:[#allocation7 + $0x4] ss:$8 sps:$4 sm:$0xff]   ;;  %v1618_v33 = vld [vmem:[#allocation7] ss:$8 sps:$4 sm:$0xff]   ;;  %v1621_v35 = vld [vmem:[#allocation9 + $0x11c] ss:$20 sps:$4 sm:$0xff]  }
  0x62   :  { %1518 = vmatmul.mubr.msk.bf16.vlgmr.msra.gmra.mxu1 %vm155_vm1, %v131_v4  ;;  %397 = vmatpush1.bf16.msra.mxu0 %v1600_v12  ;;  %v1619_v34 = vld [vmem:[#allocation9 + $0x118] ss:$20 sps:$4 sm:$0xff]   ;;  %v1627_v37 = vld [vmem:[#allocation9 + $0xf4] ss:$20 sps:$4 sm:$0xff]   ;;  %v1625_v38 = vld [vmem:[#allocation9 + $0xf0] ss:$20 sps:$4 sm:$0xff]   ;;  %v304_v12 = vlaneseq }
  0x63   :  { %1529 = vmatprep.mubr.msk.bf16.mxu1 %vm1925_vm0, %v1924_v0  ;;  %1522 = vmatpush3.bf16.msra.mxu1 %v1591_v5  ;;  %v1624_v36 = vld [vmem:[#allocation9 + $0x124] ss:$20 sps:$4 sm:$0xff]   ;;  %v1633_v39 = vld [vmem:[#allocation9 + $0xcc] ss:$20 sps:$4 sm:$0xff]   ;;  %v1631_v40 = vld [vmem:[#allocation9 + $0xc8] ss:$20 sps:$4 sm:$0xff]  }
  0x64   :  { %1523 = vmatprep.subr.bf16.mxu1 %v1924_v0  ;;  %398 = vmatprep.subr.bf16.mxu0 %v1601_v13  ;;  %v1639_v41 = vld [vmem:[#allocation9 + $0xa4] ss:$20 sps:$4 sm:$0xff]   ;;  %v1637_v42 = vld [vmem:[#allocation9 + $0xa0] ss:$20 sps:$4 sm:$0xff]   ;;  %v1385_v43 = vld [vmem:[#allocation6] ss:$0 sm:$0xff] }
  0x65   :  { %v1622_v50 = vld [vmem:[#allocation9 + $0x120] ss:$20 sps:$4 sm:$0xff]   ;;  %v1630_v52 = vld [vmem:[#allocation9 + $0xfc] ss:$20 sps:$4 sm:$0xff]   ;;  %v1628_v53 = vld [vmem:[#allocation9 + $0xf8] ss:$20 sps:$4 sm:$0xff]  }
  0x66   :  { %399 = vmatpush1.bf16.msra.mxu0 %v1603_v14  ;;  %v1636_v54 = vld [vmem:[#allocation9 + $0xd4] ss:$20 sps:$4 sm:$0xff]   ;;  %v1634_v55 = vld [vmem:[#allocation9 + $0xd0] ss:$20 sps:$4 sm:$0xff]   ;;  %v1642_v56 = vld [vmem:[#allocation9 + $0xac] ss:$20 sps:$4 sm:$0xff]  }
  0x67   :  { %1524 = vmatpush3.bf16.msra.mxu1 %v1592_v6  ;;  %400 = vmatprep.subr.bf16.mxu0 %v1604_v15  ;;  %v1640_v57 = vld [vmem:[#allocation9 + $0xa8] ss:$20 sps:$4 sm:$0xff]   ;;  %v1648_v59 = vld [vmem:[#allocation9 + $0x84] ss:$20 sps:$4 sm:$0xff]   ;;  %v1646_v61 = vld [vmem:[#allocation9 + $0x80] ss:$20 sps:$4 sm:$0xff]  }
  0x68   :  { %1525 = vmatprep.subr.bf16.mxu1 %v1924_v0  ;;  %v1645_v58 = vld [vmem:[#allocation9 + $0x7c] ss:$20 sps:$4 sm:$0xff]   ;;  %v1643_v60 = vld [vmem:[#allocation9 + $0x78] ss:$20 sps:$4 sm:$0xff]   ;;  %v1651_v62 = vld [vmem:[#allocation9 + $0x54] ss:$20 sps:$4 sm:$0xff]  }
  0x69   :  { %v1654_v63 = vld [vmem:[#allocation9 + $0x5c] ss:$20 sps:$4 sm:$0xff]   ;;  %v1652_v2 = vld [vmem:[#allocation9 + $0x58] ss:$20 sps:$4 sm:$0xff]   ;;  %v1660_v4 = vld [vmem:[#allocation9 + $0x34] ss:$20 sps:$4 sm:$0xff]  }
  0x6a   :  { %401 = vmatpush1.bf16.msra.mxu0 %v1606_v24  ;;  %v1649_v1 = vld [vmem:[#allocation9 + $0x50] ss:$20 sps:$4 sm:$0xff]   ;;  %v1657_v3 = vld [vmem:[#allocation9 + $0x2c] ss:$20 sps:$4 sm:$0xff]   ;;  %v1655_v5 = vld [vmem:[#allocation9 + $0x28] ss:$20 sps:$4 sm:$0xff]  }
  0x6b   :  { %1526 = vmatpush3.bf16.msra.mxu1 %v1593_v7  ;;  %402 = vmatprep.subr.bf16.mxu0 %v1607_v25  ;;  %v1658_v6 = vld [vmem:[#allocation9 + $0x30] ss:$20 sps:$4 sm:$0xff]   ;;  %v1661_v9 = vld [vmem:[#allocation9] ss:$20 sps:$4 sm:$0xff]   ;;  %v1664_v10 = vld [vmem:[#allocation9 + $0x8] ss:$20 sps:$4 sm:$0xff]  }
  0x6c   :  { %1527 = vmatprep.subr.bf16.mxu1 %v1924_v0  ;;  %v1663_v7 = vld [vmem:[#allocation9 + $0x4] ss:$20 sps:$4 sm:$0xff]   ;;  %v1669_v11 = vld [vmem:[#allocation10 + $0x11c] ss:$20 sps:$4 sm:$0xff]   ;;  %v2042_v13 = vshrl.u32 %v304_v12, 7 }
  0x6d   :  { %v302_v15 = vld [vmem:[%s2179_s6] sm:$0x3]  ;;  %v1730_v12 = vld [vmem:[#allocation10 + $0x10] ss:$20 sps:$4 sm:$0xff]  }
  0x6e   :  { %403 = vmatpush1.bf16.msra.mxu0 %v1609_v26  ;;  %v2045_v14 = vsub.s32 0, %v2042_v13  ;;  %v1670_v24 = vld [vmem:[#allocation9 + $0x128] ss:$20 sps:$4 sm:$0xff]  }
  0x6f   :  { %1528 = vmatpush3.bf16.msra.mxu1 %v1594_v8  ;;  %404 = vmatprep.subr.bf16.mxu0 %v1610_v27  ;;  %v1666_v8 = vld [vmem:[#allocation9 + $0xc] ss:$20 sps:$4 sm:$0xff]   ;;  %v1673_v26 = vld [vmem:[#allocation10 + $0xf4] ss:$20 sps:$4 sm:$0xff]   ;;  %v1671_v27 = vld [vmem:[#allocation10 + $0xf0] ss:$20 sps:$4 sm:$0xff]  }
  0x70   :  { %722 = vmatprep.subr.bf16.mxu1 %v1621_v35  ;;  %v1681_v35 = vld [vmem:[#allocation10 + $0xa4] ss:$20 sps:$4 sm:$0xff]  }
  0x72   :  { %405 = vmatpush1.bf16.msra.mxu0 %v1612_v28  ;;  %v1674_v28 = vld [vmem:[#allocation9 + $0x100] ss:$20 sps:$4 sm:$0xff]  }
  0x73   :  { %406 = vmatprep.subr.bf16.mxu0 %v1613_v29  ;;  %v2056_v29 = vsub.s32 1, %v2042_v13 }
  0x76   :  { %407 = vmatpush1.bf16.msra.mxu0 %v1615_v30  ;;  %v1677_v30 = vld [vmem:[#allocation10 + $0xcc] ss:$20 sps:$4 sm:$0xff]  }
  0x77   :  { %408 = vmatprep.subr.bf16.mxu0 %v1616_v32  ;;  %v1675_v32 = vld [vmem:[#allocation10 + $0xc8] ss:$20 sps:$4 sm:$0xff]  }
  0x7a   :  { %409 = vmatpush1.bf16.msra.mxu0 %v1618_v33  ;;  %v1678_v33 = vld [vmem:[#allocation9 + $0xd8] ss:$20 sps:$4 sm:$0xff]  }
  0x7b   :  { %763 = vmatprep.subr.bf16.mxu0 %v1624_v36  ;;  %v1679_v36 = vld [vmem:[#allocation10 + $0xa0] ss:$20 sps:$4 sm:$0xff]  }
 0x122   :  { %v193_v17 = vpop.f32.mrf.mxu1 }
 0x123   :  { %v194_v18 = vadd.f32 %v1381_v16, %v193_v17  ;;  %v307_v16 = vrot.slane %v302_v15, %v2045_v14 }
 0x124   :  { %v1519_v19 = vpop.f32.mrf.mxu1 }
 0x125   :  { %1731 = vtanh.f32 %v194_v18 }
 0x126   :  { %v196_v20 = vpop.f32.mrf.mxu1 }
 0x128   :  { %v1520_v21 = vpop.f32.mrf.mxu1 }
 0x132   :  { %v1732_v22 = vpop.eup %1731 }
 0x133   :  { %v200_v23 = vpack.c.bf16 %v1732_v22, %v1732_v22 }
 0x135   :  { %1530 = vmatmul.mubr.msk.bf16.vlgmr.msra.gmra.mxu1 %vm240_vm2, %v200_v23  ;;  %v1667_v23 = vld [vmem:[#allocation10 + $0x118] ss:$20 sps:$4 sm:$0xff]  }
 0x136   :  { %754 = vmatprep.mubr.bf16.mxu1 %v1926_v31  ;;  %723 = vmatpush1.bf16.msra.mxu1 %v1619_v34  ;;  %v311_v34 = vrot.slane %v302_v15, %v2056_v29 }
 0x137   :  { %724 = vmatprep.subr.bf16.mxu1 %v1627_v37  ;;  %v1682_v37 = vld [vmem:[#allocation9 + $0xb0] ss:$20 sps:$4 sm:$0xff]  }
 0x13a   :  { %725 = vmatpush1.bf16.msra.mxu1 %v1625_v38 }
 0x13b   :  { %726 = vmatprep.subr.bf16.mxu1 %v1633_v39  ;;  %v1685_v39 = vld [vmem:[#allocation10 + $0x7c] ss:$20 sps:$4 sm:$0xff]  }
 0x13e   :  { %727 = vmatpush1.bf16.msra.mxu1 %v1631_v40  ;;  %v1683_v40 = vld [vmem:[#allocation10 + $0x78] ss:$20 sps:$4 sm:$0xff]  }
 0x13f   :  { %728 = vmatprep.subr.bf16.mxu1 %v1639_v41  ;;  %v1686_v41 = vld [vmem:[#allocation9 + $0x88] ss:$20 sps:$4 sm:$0xff]  }
 0x142   :  { %729 = vmatpush1.bf16.msra.mxu1 %v1637_v42  ;;  %v1689_v42 = vld [vmem:[#allocation10 + $0x54] ss:$20 sps:$4 sm:$0xff]  }
 0x143   :  { %730 = vmatprep.subr.bf16.mxu1 %v1645_v58  ;;  %v1706_v58 = vld [vmem:[#allocation10 + $0x100] ss:$20 sps:$4 sm:$0xff]  }
 0x146   :  { %731 = vmatpush1.bf16.msra.mxu1 %v1643_v60  ;;  %v1707_v60 = vld [vmem:[#allocation10 + $0xd0] ss:$20 sps:$4 sm:$0xff]  }
 0x147   :  { %732 = vmatprep.subr.bf16.mxu1 %v1651_v62  ;;  %v1713_v62 = vld [vmem:[#allocation10 + $0xac] ss:$20 sps:$4 sm:$0xff]  }
 0x14a   :  { %733 = vmatpush1.bf16.msra.mxu1 %v1649_v1  ;;  %v1714_v1 = vld [vmem:[#allocation10 + $0xb0] ss:$20 sps:$4 sm:$0xff]  }
 0x14b   :  { %734 = vmatprep.subr.bf16.mxu1 %v1657_v3  ;;  %v1718_v3 = vld [vmem:[#allocation10 + $0x88] ss:$20 sps:$4 sm:$0xff]  }
 0x14e   :  { %735 = vmatpush1.bf16.msra.mxu1 %v1655_v5  ;;  %v1719_v5 = vld [vmem:[#allocation10 + $0x58] ss:$20 sps:$4 sm:$0xff]  }
 0x14f   :  { %736 = vmatprep.subr.bf16.mxu1 %v1663_v7  ;;  %v1725_v7 = vld [vmem:[#allocation10 + $0x34] ss:$20 sps:$4 sm:$0xff]  }
 0x152   :  { %737 = vmatpush1.bf16.msra.mxu1 %v1661_v9  ;;  %v1726_v9 = vld [vmem:[#allocation10 + $0x38] ss:$20 sps:$4 sm:$0xff]  }
 0x153   :  { %1533 = vmatprep.subr.bf16.mxu1 %v1924_v0 }
 0x1f5   :  { %v278_v44 = vpop.f32.mrf.mxu1 }
 0x1f6   :  { %v279_v45 = vadd.f32 %v1385_v43, %v278_v44  ;;  %v1687_v43 = vld [vmem:[#allocation10 + $0x50] ss:$20 sps:$4 sm:$0xff]   ;;  %v1690_v44 = vld [vmem:[#allocation9 + $0x60] ss:$20 sps:$4 sm:$0xff]  }
 0x1f7   :  { %v1531_v46 = vpop.f32.mrf.mxu1 }
 0x1f8   :  { %1733 = vtanh.f32 %v279_v45  ;;  %v1693_v45 = vld [vmem:[#allocation10 + $0x2c] ss:$20 sps:$4 sm:$0xff]   ;;  %v1691_v46 = vld [vmem:[#allocation10 + $0x28] ss:$20 sps:$4 sm:$0xff]  }
 0x1f9   :  { %v281_v47 = vpop.f32.mrf.mxu1 }
 0x1fa   :  { %v1694_v47 = vld [vmem:[#allocation9 + $0x38] ss:$20 sps:$4 sm:$0xff]  }
 0x1fb   :  { %v1532_v48 = vpop.f32.mrf.mxu1 }
 0x1fc   :  { %v1697_v48 = vld [vmem:[#allocation10 + $0x4] ss:$20 sps:$4 sm:$0xff]  }
 0x205   :  { %v1734_v49 = vpop.eup %1733 }
 0x206   :  { %v285_v51 = vpack.c.bf16 %v1734_v49, %v1734_v49  ;;  %v1695_v49 = vld [vmem:[#allocation10] ss:$20 sps:$4 sm:$0xff]  }
 0x208   :  { %427 = vmatmul.mubr.bf16.vlgmr.msra.gmra.mxu0 %v285_v51  ;;  %v1701_v51 = vld [vmem:[#allocation10 + $0x124] ss:$20 sps:$4 sm:$0xff]  }
 0x209   :  { %764 = vmatpush1.bf16.msra.mxu0 %v1622_v50  ;;  %795 = vmatprep.mubr.bf16.mxu0 %v1926_v31  ;;  %v1698_v50 = vld [vmem:[#allocation9 + $0x10] ss:$20 sps:$4 sm:$0xff]  }
 0x20a   :  { %765 = vmatprep.subr.bf16.mxu0 %v1630_v52 }
 0x20d   :  { %766 = vmatpush1.bf16.msra.mxu0 %v1628_v53  ;;  %v1699_v53 = vld [vmem:[#allocation10 + $0x120] ss:$20 sps:$4 sm:$0xff]  }
 0x20e   :  { %767 = vmatprep.subr.bf16.mxu0 %v1636_v54  ;;  %v1702_v54 = vld [vmem:[#allocation10 + $0x128] ss:$20 sps:$4 sm:$0xff]  }
 0x211   :  { %768 = vmatpush1.bf16.msra.mxu0 %v1634_v55 }
 0x212   :  { %769 = vmatprep.subr.bf16.mxu0 %v1642_v56  ;;  %v1705_v56 = vld [vmem:[#allocation10 + $0xfc] ss:$20 sps:$4 sm:$0xff]  }
 0x215   :  { %770 = vmatpush1.bf16.msra.mxu0 %v1640_v57  ;;  %v1703_v57 = vld [vmem:[#allocation10 + $0xf8] ss:$20 sps:$4 sm:$0xff]  }
 0x216   :  { %771 = vmatprep.subr.bf16.mxu0 %v1648_v59  ;;  %v1709_v59 = vld [vmem:[#allocation10 + $0xd4] ss:$20 sps:$4 sm:$0xff]  }
 0x219   :  { %772 = vmatpush1.bf16.msra.mxu0 %v1646_v61  ;;  %v1710_v61 = vld [vmem:[#allocation10 + $0xd8] ss:$20 sps:$4 sm:$0xff]  }
 0x21a   :  { %773 = vmatprep.subr.bf16.mxu0 %v1654_v63  ;;  %v1711_v63 = vld [vmem:[#allocation10 + $0xa8] ss:$20 sps:$4 sm:$0xff]  }
 0x21d   :  { %774 = vmatpush1.bf16.msra.mxu0 %v1652_v2  ;;  %v1717_v2 = vld [vmem:[#allocation10 + $0x84] ss:$20 sps:$4 sm:$0xff]  }
 0x21e   :  { %775 = vmatprep.subr.bf16.mxu0 %v1660_v4  ;;  %v1721_v4 = vld [vmem:[#allocation10 + $0x5c] ss:$20 sps:$4 sm:$0xff]  }
 0x221   :  { %776 = vmatpush1.bf16.msra.mxu0 %v1658_v6  ;;  %v1722_v6 = vld [vmem:[#allocation10 + $0x60] ss:$20 sps:$4 sm:$0xff]  }
 0x222   :  { %777 = vmatprep.subr.bf16.mxu0 %v1666_v8  ;;  %v1723_v8 = vld [vmem:[#allocation10 + $0x30] ss:$20 sps:$4 sm:$0xff]  }
 0x225   :  { %778 = vmatpush1.bf16.msra.mxu0 %v1664_v10  ;;  %v1729_v10 = vld [vmem:[#allocation10 + $0xc] ss:$20 sps:$4 sm:$0xff]  }
 0x226   :  { %1127 = vmatprep.subr.bf16.mxu0 %v1669_v11  ;;  %v1727_v11 = vld [vmem:[#allocation10 + $0x8] ss:$20 sps:$4 sm:$0xff]  }
 0x2c8   :  { %v428_v17 = vpop.f32.mrf.mxu0 }
 0x2c9   :  { %v429_v18 = vadd.f32 %v428_v17, %v307_v16 }
 0x2ca   :  { %v430_v19 = vpop.f32.mrf.mxu0 }
 0x2cb   :  { %1735 = vtanh.f32 %v429_v18  ;;  %v431_v38 = vadd.f32 %v430_v19, %v311_v34 }
 0x2cc   :  { %v432_v20 = vpop.f32.mrf.mxu0 }
 0x2cd   :  { %1737 = vtanh.f32 %v431_v38 }
 0x2ce   :  { %v433_v21 = vpop.f32.mrf.mxu0 }
 0x2d8   :  { %v1736_v22 = vpop.eup %1735 }
 0x2d9   :  { %v2051_v25 = vpack.c.bf16 %v1736_v22, %v1736_v22 }
 0x2da   :  { %v1738_v52 = vpop.eup %1737 }
 0x2db   :  { %755 = vmatmul.mubr.bf16.vlgmr.msra.gmra.mxu1 %v2051_v25  ;;  %796 = vmatmul.mubr.bf16.vlgmr.msra.gmra.mxu0 %v2051_v25  ;;  %v438_v55 = vpack.c.bf16 %v1738_v52, %v1738_v52 }
 0x2dc   :  { %1534 = vmatpush3.bf16.msra.mxu1 %v1670_v24  ;;  %1128 = vmatpush1.bf16.msra.mxu0 %v1667_v23  ;;  %v487_v23 = vld [vmem:[%s2181_s8] sm:$0x1f] }
 0x2dd   :  { %1535 = vmatprep.subr.bf16.mxu1 %v1924_v0  ;;  %1129 = vmatprep.subr.bf16.mxu0 %v1673_v26  ;;  %v496_v24 = vrot.slane %v487_v23, %v2056_v29 }
 0x2de   :  { %1549 = vmatprep.mubr.msk.bf16.mxu1 %vm1925_vm0, %v1924_v0  ;;  %1159 = vmatprep.mubr.bf16.mxu0 %v1926_v31 }
 0x2e0   :  { %1536 = vmatpush3.bf16.msra.mxu1 %v1674_v28  ;;  %1130 = vmatpush1.bf16.msra.mxu0 %v1671_v27 }
 0x2e1   :  { %1537 = vmatprep.subr.bf16.mxu1 %v1924_v0  ;;  %1131 = vmatprep.subr.bf16.mxu0 %v1677_v30  ;;  %v503_v30 = vsub.s32 3, %v2042_v13 }
 0x2e4   :  { %1538 = vmatpush3.bf16.msra.mxu1 %v1678_v33  ;;  %1132 = vmatpush1.bf16.msra.mxu0 %v1675_v32  ;;  %v507_v33 = vsub.s32 4, %v2042_v13 }
 0x2e5   :  { %1539 = vmatprep.subr.bf16.mxu1 %v1924_v0  ;;  %1133 = vmatprep.subr.bf16.mxu0 %v1681_v35  ;;  %v504_v35 = vrot.slane %v487_v23, %v503_v30 }
 0x2e8   :  { %1540 = vmatpush3.bf16.msra.mxu1 %v1682_v37  ;;  %1134 = vmatpush1.bf16.msra.mxu0 %v1679_v36  ;;  %v508_v37 = vrot.slane %v487_v23, %v507_v33 }
 0x2e9   :  { %1541 = vmatprep.subr.bf16.mxu1 %v1924_v0  ;;  %1135 = vmatprep.subr.bf16.mxu0 %v1685_v39 }
 0x2ec   :  { %1542 = vmatpush3.bf16.msra.mxu1 %v1686_v41  ;;  %1136 = vmatpush1.bf16.msra.mxu0 %v1683_v40 }
 0x2ed   :  { %1543 = vmatprep.subr.bf16.mxu1 %v1924_v0  ;;  %1137 = vmatprep.subr.bf16.mxu0 %v1689_v42 }
 0x2f0   :  { %1544 = vmatpush3.bf16.msra.mxu1 %v1690_v44  ;;  %1138 = vmatpush1.bf16.msra.mxu0 %v1687_v43 }
 0x2f1   :  { %1545 = vmatprep.subr.bf16.mxu1 %v1924_v0  ;;  %1139 = vmatprep.subr.bf16.mxu0 %v1693_v45 }
 0x2f4   :  { %1546 = vmatpush3.bf16.msra.mxu1 %v1694_v47  ;;  %1140 = vmatpush1.bf16.msra.mxu0 %v1691_v46 }
 0x2f5   :  { %1547 = vmatprep.subr.bf16.mxu1 %v1924_v0  ;;  %1141 = vmatprep.subr.bf16.mxu0 %v1697_v48 }
 0x2f8   :  { %1548 = vmatpush3.bf16.msra.mxu1 %v1698_v50  ;;  %1142 = vmatpush1.bf16.msra.mxu0 %v1695_v49 }
 0x2f9   :  { %1168 = vmatprep.subr.bf16.mxu1 %v1701_v51  ;;  %1553 = vmatprep.subr.bf16.mxu0 %v1924_v0 }
 0x2fb   :  { %1550 = vmatmul.mubr.bf16.vlgmr.msra.gmra.mxu1 %v2051_v25  ;;  %1160 = vmatmul.mubr.bf16.vlgmr.msra.gmra.mxu0 %v438_v55  ;;  %v499_v25 = vsub.s32 2, %v2042_v13 }
 0x2fc   :  { %1169 = vmatpush1.bf16.msra.mxu1 %v1699_v53  ;;  %1554 = vmatpush3.bf16.msra.mxu0 %v1702_v54 }
 0x2fd   :  { %1170 = vmatprep.subr.bf16.mxu1 %v1705_v56  ;;  %1555 = vmatprep.subr.bf16.mxu0 %v1924_v0  ;;  %v500_v28 = vrot.slane %v487_v23, %v499_v25 }
 0x2fe   :  { %1200 = vmatprep.mubr.bf16.mxu1 %v1926_v31  ;;  %1569 = vmatprep.mubr.msk.bf16.mxu0 %vm1925_vm0, %v1924_v0  ;;  %v1715_v31 = vld [vmem:[#allocation10 + $0x80] ss:$20 sps:$4 sm:$0xff]  }
 0x300   :  { %1171 = vmatpush1.bf16.msra.mxu1 %v1703_v57  ;;  %1556 = vmatpush3.bf16.msra.mxu0 %v1706_v58 }
 0x301   :  { %1172 = vmatprep.subr.bf16.mxu1 %v1709_v59  ;;  %1557 = vmatprep.subr.bf16.mxu0 %v1924_v0 }
 0x304   :  { %1173 = vmatpush1.bf16.msra.mxu1 %v1707_v60  ;;  %1558 = vmatpush3.bf16.msra.mxu0 %v1710_v61 }
 0x305   :  { %1174 = vmatprep.subr.bf16.mxu1 %v1713_v62  ;;  %1559 = vmatprep.subr.bf16.mxu0 %v1924_v0 }
 0x308   :  { %1175 = vmatpush1.bf16.msra.mxu1 %v1711_v63  ;;  %1560 = vmatpush3.bf16.msra.mxu0 %v1714_v1 }
 0x309   :  { %1176 = vmatprep.subr.bf16.mxu1 %v1717_v2  ;;  %1561 = vmatprep.subr.bf16.mxu0 %v1924_v0 }
 0x30c   :  { %1177 = vmatpush1.bf16.msra.mxu1 %v1715_v31  ;;  %1562 = vmatpush3.bf16.msra.mxu0 %v1718_v3  ;;  %v892_v31 = vld [vmem:[#allocation12] sm:$0x1f] }
 0x30d   :  { %1178 = vmatprep.subr.bf16.mxu1 %v1721_v4  ;;  %1563 = vmatprep.subr.bf16.mxu0 %v1924_v0 }
 0x310   :  { %1179 = vmatpush1.bf16.msra.mxu1 %v1719_v5  ;;  %1564 = vmatpush3.bf16.msra.mxu0 %v1722_v6  ;;  %v901_v5 = vrot.slane %v892_v31, %v2056_v29 }
 0x311   :  { %1180 = vmatprep.subr.bf16.mxu1 %v1725_v7  ;;  %1565 = vmatprep.subr.bf16.mxu0 %v1924_v0 }
 0x314   :  { %1181 = vmatpush1.bf16.msra.mxu1 %v1723_v8  ;;  %1566 = vmatpush3.bf16.msra.mxu0 %v1726_v9 }
 0x315   :  { %1182 = vmatprep.subr.bf16.mxu1 %v1729_v10  ;;  %1567 = vmatprep.subr.bf16.mxu0 %v1924_v0  ;;  %v492_v0 = vrot.slane %v487_v23, %v2045_v14  ;;  %v897_v10 = vrot.slane %v892_v31, %v2045_v14  ;;  %v913_v14 = vrot.slane %v892_v31, %v507_v33 }
 0x318   :  { %1183 = vmatpush1.bf16.msra.mxu1 %v1727_v11  ;;  %1568 = vmatpush3.bf16.msra.mxu0 %v1730_v12  ;;  %v905_v12 = vrot.slane %v892_v31, %v499_v25 }
 0x31b   :  { %1201 = vmatmul.mubr.bf16.vlgmr.msra.gmra.mxu1 %v438_v55  ;;  %1570 = vmatmul.mubr.bf16.vlgmr.msra.gmra.mxu0 %v438_v55 }
 0x39b   :  { %v756_v15 = vpop.f32.mrf.mxu1  ;;  %v797_v16 = vpop.f32.mrf.mxu0 }
 0x39c   :  { %v757_v27 = vadd.f32 %v756_v15, %v492_v0  ;;  %v798_v34 = vadd.f32 %v797_v16, %v500_v28 }
 0x39d   :  { %v758_v17 = vpop.f32.mrf.mxu1  ;;  %v799_v18 = vpop.f32.mrf.mxu0 }
 0x39e   :  { %v759_v26 = vadd.f32 %v758_v17, %v496_v24  ;;  %v800_v38 = vadd.f32 %v799_v18, %v504_v35  ;;  %v909_v17 = vrot.slane %v892_v31, %v503_v30 }
 0x39f   :  { %v760_v19 = vpop.f32.mrf.mxu1  ;;  %v801_v20 = vpop.f32.mrf.mxu0 }
 0x3a0   :  { %v1249_v32 = vmax.f32 %v757_v27, %v759_v26 }
 0x3a1   :  { %v761_v21 = vpop.f32.mrf.mxu1  ;;  %v802_v22 = vpop.f32.mrf.mxu0 }
 0x3a2   :  { %v1250_v36 = vmax.f32 %v1249_v32, %v798_v34 }
 0x3a4   :  { %v1251_v41 = vmax.f32 %v1250_v36, %v800_v38 }
 0x3bb   :  { %v838_v39 = vpop.f32.mrf.mxu1  ;;  %v1161_v40 = vpop.f32.mrf.mxu0 }
 0x3bc   :  { %v839_v42 = vadd.f32 %v838_v39, %v508_v37  ;;  %v1162_v16 = vadd.f32 %v1161_v40, %v897_v10 }
 0x3bd   :  { %v1551_v43 = vpop.f32.mrf.mxu1  ;;  %v1163_v44 = vpop.f32.mrf.mxu0 }
 0x3be   :  { %v1252_v45 = vmax.f32 %v1251_v41, %v839_v42  ;;  %v1164_v29 = vadd.f32 %v1163_v44, %v901_v5 }
 0x3bf   :  { %v841_v46 = vpop.f32.mrf.mxu1  ;;  %v1165_v47 = vpop.f32.mrf.mxu0 }
 0x3c0   :  { %v1253_v48 = vsub.f32 %v757_v27, %v1252_v45  ;;  %v1259_v49 = vsub.f32 %v759_v26, %v1252_v45  ;;  %v1265_v50 = vsub.f32 %v798_v34, %v1252_v45  ;;  %v1271_v51 = vsub.f32 %v800_v38, %v1252_v45 }
 0x3c1   :  { %v1277_v52 = vsub.f32 %v839_v42, %v1252_v45  ;;  %v1552_v53 = vpop.f32.mrf.mxu1  ;;  %v1166_v54 = vpop.f32.mrf.mxu0  ;;  %v1309_v20 = vmax.f32 %v1162_v16, %v1164_v29 }
 0x3c2   :  { %v1254_v55 = vmul.f32 1.442695, %v1253_v48  ;;  %v1260_v56 = vmul.f32 1.442695, %v1259_v49  ;;  %v1266_v57 = vmul.f32 1.442695, %v1265_v50 }
 0x3c3   :  { %v1272_v58 = vmul.f32 1.442695, %v1271_v51  ;;  %v1278_v59 = vmul.f32 1.442695, %v1277_v52 }
 0x3c4   :  { %1739 = vpow2.f32 %v1254_v55 }
 0x3c5   :  { %1741 = vpow2.f32 %v1260_v56 }
 0x3c6   :  { %1743 = vpow2.f32 %v1266_v57 }
 0x3c7   :  { %1745 = vpow2.f32 %v1272_v58 }
 0x3c8   :  { %1747 = vpow2.f32 %v1278_v59 }
 0x3d1   :  { %v1740_v60 = vpop.eup %1739 }
 0x3d2   :  { %v1742_v61 = vpop.eup %1741  ;;  %v1257_v62 = vpack.c.bf16 %v1740_v60, %v1740_v60 }
 0x3d3   :  { %v1744_v63 = vpop.eup %1743  ;;  %v1262_v1 = vadd.f32 %v1742_v61, %v1740_v60  ;;  %v1263_v2 = vpack.c.bf16 %v1742_v61, %v1742_v61 }
 0x3d4   :  { %v1746_v3 = vpop.eup %1745  ;;  %1258 = vst [vmem:[%s2184_s11] sm:$0xf] %v1257_v62  ;;  %v1269_v4 = vpack.c.bf16 %v1744_v63, %v1744_v63 }
 0x3d5   :  { %v1748_v6 = vpop.eup %1747  ;;  %1264 = vst [vmem:[%s2184_s11 + $0x4] sm:$0xf] %v1263_v2  ;;  %v1268_v7 = vadd.f32 %v1744_v63, %v1262_v1  ;;  %v1275_v8 = vpack.c.bf16 %v1746_v3, %v1746_v3 }
 0x3d6   :  { %1270 = vst [vmem:[%s2184_s11 + $0x8] sm:$0xf] %v1269_v4  ;;  %v1281_v9 = vpack.c.bf16 %v1748_v6, %v1748_v6 }
 0x3d7   :  { %v1274_v11 = vadd.f32 %v1746_v3, %v1268_v7  ;;  %1276 = vst [vmem:[%s2184_s11 + $0xc] sm:$0xf] %v1275_v8 }
 0x3d8   :  { %1282 = vst [vmem:[%s2184_s11 + $0x10] sm:$0xf] %v1281_v9 }
 0x3d9   :  { %v1280_v15 = vadd.f32 %v1748_v6, %v1274_v11 }
 0x3db   :  { %1749 = vrcp.f32 %v1280_v15  ;;  %v1202_v18 = vpop.f32.mrf.mxu1  ;;  %v1243_v19 = vpop.f32.mrf.mxu0 }
 0x3dc   :  { %v1203_v21 = vadd.f32 %v1202_v18, %v905_v12  ;;  %v1244_v28 = vadd.f32 %v1243_v19, %v913_v14  ;;  %v1284_v30 = vld [vmem:[%s2184_s11] sm:$0xff]  }
 0x3dd   :  { %v1204_v22 = vpop.f32.mrf.mxu1  ;;  %v1571_v23 = vpop.f32.mrf.mxu0  ;;  %v1285_v43 = vunpack.c.l.bf16 %v1284_v30  ;;  %v1290_v44 = vunpack.c.h.bf16 %v1284_v30 }
 0x3de   :  { %v1310_v24 = vmax.f32 %v1309_v20, %v1203_v21  ;;  %v1205_v0 = vadd.f32 %v1204_v22, %v909_v17  ;;  %v1294_v13 = vld [vmem:[%s2184_s11 + $0x8] sm:$0xff]  }
 0x3df   :  { %v1206_v26 = vpop.f32.mrf.mxu1  ;;  %v1246_v27 = vpop.f32.mrf.mxu0  ;;  %v1304_v39 = vld [vmem:[%s2184_s11 + $0x10] sm:$0xf]  ;;  %v1295_v45 = vunpack.c.l.bf16 %v1294_v13  ;;  %v1300_v46 = vunpack.c.h.bf16 %v1294_v13 }
 0x3e0   :  { %v1311_v32 = vmax.f32 %v1310_v24, %v1205_v0  ;;  %v1305_v48 = vunpack.c.l.bf16 %v1304_v39 }
 0x3e1   :  { %v1207_v25 = vpop.f32.mrf.mxu1  ;;  %v1572_v34 = vpop.f32.mrf.mxu0 }
 0x3e2   :  { %v1312_v35 = vmax.f32 %v1311_v32, %v1244_v28 }
 0x3e4   :  { %v1313_v33 = vsub.f32 %v1162_v16, %v1312_v35  ;;  %v1319_v36 = vsub.f32 %v1164_v29, %v1312_v35  ;;  %v1325_v37 = vsub.f32 %v1203_v21, %v1312_v35  ;;  %v1331_v38 = vsub.f32 %v1205_v0, %v1312_v35 }
 0x3e5   :  { %v1337_v42 = vsub.f32 %v1244_v28, %v1312_v35 }
 0x3e6   :  { %v1314_v40 = vmul.f32 1.442695, %v1313_v33  ;;  %v1320_v41 = vmul.f32 1.442695, %v1319_v36  ;;  %v1326_v49 = vmul.f32 1.442695, %v1325_v37 }
 0x3e7   :  { %v1332_v50 = vmul.f32 1.442695, %v1331_v38  ;;  %v1338_v56 = vmul.f32 1.442695, %v1337_v42 }
 0x3e8   :  { %v1750_v47 = vpop.eup %1749  ;;  %1751 = vpow2.f32 %v1314_v40 }
 0x3e9   :  { %v1286_v51 = vmul.f32 %v1750_v47, %v1285_v43  ;;  %v1291_v52 = vmul.f32 %v1750_v47, %v1290_v44  ;;  %v1296_v53 = vmul.f32 %v1750_v47, %v1295_v45  ;;  %v1301_v54 = vmul.f32 %v1750_v47, %v1300_v46 }
 0x3ea   :  { %v1306_v55 = vmul.f32 %v1750_v47, %v1305_v48  ;;  %1753 = vpow2.f32 %v1320_v41 }
 0x3eb   :  { %v1287_v57 = vpack.c.bf16 %v1286_v51, %v1286_v51  ;;  %v1292_v58 = vpack.c.bf16 %v1291_v52, %v1291_v52  ;;  %v1297_v59 = vpack.c.bf16 %v1296_v53, %v1296_v53  ;;  %v1302_v60 = vpack.c.bf16 %v1301_v54, %v1301_v54 }
 0x3ec   :  { %v1307_v61 = vpack.c.bf16 %v1306_v55, %v1306_v55  ;;  %1755 = vpow2.f32 %v1326_v49 }
 0x3ed   :  { %1288 = vst [vmem:[%s2184_s11] sm:$0xf] %v1287_v57  ;;  %1293 = vst [vmem:[%s2184_s11 + $0x4] sm:$0xf] %v1292_v58  ;;  %1757 = vpow2.f32 %v1332_v50 }
 0x3ee   :  { %1298 = vst [vmem:[%s2184_s11 + $0x8] sm:$0xf] %v1297_v59  ;;  %1303 = vst [vmem:[%s2184_s11 + $0xc] sm:$0xf] %v1302_v60  ;;  %1759 = vpow2.f32 %v1338_v56 }
 0x3ef   :  { %1308 = vst [vmem:[%s2184_s11 + $0x10] sm:$0xf] %v1307_v61 }
 0x3f5   :  { %v1752_v62 = vpop.eup %1751 }
 0x3f6   :  { %v1317_v63 = vpack.c.bf16 %v1752_v62, %v1752_v62 }
 0x3f7   :  { %v1754_v1 = vpop.eup %1753 }
 0x3f8   :  { %1318 = vst [vmem:[%s2185_s12] sm:$0xf] %v1317_v63  ;;  %v1322_v2 = vadd.f32 %v1754_v1, %v1752_v62  ;;  %v1323_v31 = vpack.c.bf16 %v1754_v1, %v1754_v1 }
 0x3f9   :  { %v1756_v3 = vpop.eup %1755 }
 0x3fa   :  { %v1758_v4 = vpop.eup %1757  ;;  %1324 = vst [vmem:[%s2185_s12 + $0x4] sm:$0xf] %v1323_v31  ;;  %v1328_v5 = vadd.f32 %v1756_v3, %v1322_v2  ;;  %v1329_v6 = vpack.c.bf16 %v1756_v3, %v1756_v3 }
 0x3fb   :  { %v1760_v7 = vpop.eup %1759  ;;  %v1335_v8 = vpack.c.bf16 %v1758_v4, %v1758_v4 }
 0x3fc   :  { %1330 = vst [vmem:[%s2185_s12 + $0x8] sm:$0xf] %v1329_v6  ;;  %v1334_v9 = vadd.f32 %v1758_v4, %v1328_v5  ;;  %v1341_v10 = vpack.c.bf16 %v1760_v7, %v1760_v7 }
 0x3fd   :  { %1336 = vst [vmem:[%s2185_s12 + $0xc] sm:$0xf] %v1335_v8 }
 0x3fe   :  { %v1340_v11 = vadd.f32 %v1760_v7, %v1334_v9  ;;  %1342 = vst [vmem:[%s2185_s12 + $0x10] sm:$0xf] %v1341_v10 }
 0x400   :  { %1761 = vrcp.f32 %v1340_v11 }
 0x401   :  { %v1344_v29 = vld [vmem:[%s2185_s12] sm:$0xff]  }
 0x402   :  { %v1345_v16 = vunpack.c.l.bf16 %v1344_v29  ;;  %v1350_v17 = vunpack.c.h.bf16 %v1344_v29 }
 0x404   :  { %v1354_v12 = vld [vmem:[%s2185_s12 + $0x8] sm:$0xff]  }
 0x405   :  { %v1364_v15 = vld [vmem:[%s2185_s12 + $0x10] sm:$0xf]  ;;  %v1355_v18 = vunpack.c.l.bf16 %v1354_v12  ;;  %v1360_v19 = vunpack.c.h.bf16 %v1354_v12 }
 0x406   :  { %v1365_v21 = vunpack.c.l.bf16 %v1364_v15 }
 0x40d   :  { %v1762_v20 = vpop.eup %1761 }
 0x40e   :  { %v1346_v14 = vmul.f32 %v1762_v20, %v1345_v16  ;;  %v1351_v22 = vmul.f32 %v1762_v20, %v1350_v17  ;;  %v1356_v23 = vmul.f32 %v1762_v20, %v1355_v18  ;;  %v1361_v24 = vmul.f32 %v1762_v20, %v1360_v19 }
 0x40f   :  { %v1366_v0 = vmul.f32 %v1762_v20, %v1365_v21 }
 0x410   :  { %v1347_v26 = vpack.c.bf16 %v1346_v14, %v1346_v14  ;;  %v1352_v27 = vpack.c.bf16 %v1351_v22, %v1351_v22  ;;  %v1357_v28 = vpack.c.bf16 %v1356_v23, %v1356_v23  ;;  %v1362_v32 = vpack.c.bf16 %v1361_v24, %v1361_v24 }
 0x411   :  { %v1367_v25 = vpack.c.bf16 %v1366_v0, %v1366_v0 }
 0x412   :  { %1348 = vst [vmem:[%s2185_s12] sm:$0xf] %v1347_v26  ;;  %1353 = vst [vmem:[%s2185_s12 + $0x4] sm:$0xf] %v1352_v27 }
 0x413   :  { %1358 = vst [vmem:[%s2185_s12 + $0x8] sm:$0xf] %v1357_v28  ;;  %1363 = vst [vmem:[%s2185_s12 + $0xc] sm:$0xf] %v1362_v32 }
 0x414   :  { %1368 = vst [vmem:[%s2185_s12 + $0x10] sm:$0xf] %v1367_v25 }
 0x415   :  { %1377 = vsyncpa [#allocation3], 1 }
 0x416   :  { %1378 = vsyncpa [#allocation5], 1 }
 0x417   :  { %1379 = vsyncpa [#allocation8], 1 }
 0x418   :  { %1380 = vsyncpa [#allocation11], 1 }

</bundles_post_ra>
